<compile_context>
chip_gen: v5e
topology: v5e:2x2
jax: 0.10.0
libtpu: 0.0.40
codegen_flags: <defaults>
</compile_context>

<pallas_src>
import jax
import jax.numpy as jnp
from jax.experimental import pallas as pl
from jax.experimental.pallas import tpu as pltpu

# ----- model dimensions -------------------------------------------------------
B, C_IN, H, W = 2, 4, 16, 16
C_OUT = 8
K = 3                          # 3x3 conv, stride 1, padding 1
HW = H * W                     # 256  (lane-dense spatial flatten)
FEAT = C_OUT * HW              # 2048 (NCHW flatten of the fe output)
HID = 32
PROJ = 16

ROWS = B * C_IN                # 8 rows = (batch, in_channel): one sublane tile
TAPS = K * K                   # 9 conv taps
PCOLS = TAPS * ROWS            # 72: im2col contraction dimension
PADL = 128                     # lane offset of the image inside the pad scratch
XF_LEN = PADL + HW + 128       # 512 lanes: [zeros | image | zeros]


# ----- fused Pallas kernel ----------------------------------------------------
def simclr_fused_kernel(x_ref, wmat_ref, bconv_ref, w1_ref, b1_ref, w2_ref,
                        b2_ref, f_ref, z_ref, xf_ref, p_ref):
    """fe (conv3x3 + ReLU) -> NCHW flatten -> ph (Linear-ReLU-Linear), fused.

    x_ref    : [B*C_IN, H*W]     lane-flat NCHW input (row = b*C_IN + c_in)
    wmat_ref : [B*C_OUT, 72]     packed conv weights (batch-expanded im2col)
    bconv_ref: [B*C_OUT, 1]      conv bias per (batch, out_channel) row
    w1_ref   : [FEAT, HID]       b1_ref: [1, HID]
    w2_ref   : [HID, PROJ]       b2_ref: [1, PROJ]
    f_ref    : [B, FEAT]         output: f_xi (NCHW flatten, lane-dense)
    z_ref    : [B, PROJ]         output: ph(f_xi)
    xf_ref   : [B*C_IN, XF_LEN]  scratch: zero-padded lane-flat image
    p_ref    : [72, H*W]         scratch: im2col patch matrix
    """
    # ---- in-kernel zero padding of the lane-flat image ----------------------
    xf_ref[...] = jnp.zeros_like(xf_ref)
    xf_ref[:, PADL:PADL + HW] = x_ref[...]            # 128-aligned 256-lane store

    # ---- build the im2col patch matrix from shifted-window reads ------------
    # lane p = h*W + w ; tap offset (dh, dw) == flat lane shift of dh*W + dw.
    # Rows/image borders along h fall into the zero pad automatically; only the
    # w-wraparound (reading the neighbouring row) needs an explicit mask.
    w_idx = jax.lax.broadcasted_iota(jnp.int32, (ROWS, HW), 1) % W
    for kh in range(K):
        for kw in range(K):
            dh, dw = kh - 1, kw - 1
            start = PADL + dh * W + dw                # static, always in-bounds
            win = xf_ref[:, start:start + HW]         # [8, 256] shifted window
            if dw == -1:
                win = jnp.where(w_idx >= 1, win, 0.0)
            elif dw == 1:
                win = jnp.where(w_idx <= W - 2, win, 0.0)
            t = kh * K + kw
            p_ref[t * ROWS:(t + 1) * ROWS, :] = win   # aligned [8, 256] store

    # ---- conv as ONE MXU matmul; lane-dense [16, 256] accumulator ------------
    acc = jnp.dot(wmat_ref[...], p_ref[...],
                  preferred_element_type=jnp.float32)     # [B*C_OUT, HW]
    fe = jnp.maximum(acc + bconv_ref[...], 0.0)           # bias + ReLU

    # ---- emit f_xi directly in NCHW-flatten order ([B, 2048], lane-dense) ----
    for b in range(B):
        for c in range(C_OUT):
            row = b * C_OUT + c
            f_ref[b:b + 1, c * HW:(c + 1) * HW] = fe[row:row + 1, :]

    # ---- projection head on the VMEM-resident features -----------------------
    f = f_ref[...]                                          # [B, FEAT]
    h = jnp.dot(f, w1_ref[...],
                preferred_element_type=jnp.float32) + b1_ref[...]
    h = jnp.maximum(h, 0.0)
    z_ref[...] = jnp.dot(h, w2_ref[...],
                         preferred_element_type=jnp.float32) + b2_ref[...]


# ----- wrapper ----------------------------------------------------------------
def _vmem():
    return pl.BlockSpec(memory_space=pltpu.VMEM)


@jax.jit
def simclr_forward(x_nchw, kparams):
    """Equivalent of SimClrModel.forward: returns (f_xi, ph(f_xi))."""
    wmat, bconv, w1, b1, w2, b2 = kparams
    # Row-major collapse of (B, C_IN) onto rows; the only op outside the kernel.
    x2d = x_nchw.reshape(ROWS, HW)
    f_xi, z = pl.pallas_call(
        simclr_fused_kernel,
        out_shape=(jax.ShapeDtypeStruct((B, FEAT), jnp.float32),
                   jax.ShapeDtypeStruct((B, PROJ), jnp.float32)),
        in_specs=[_vmem()] * 7,
        out_specs=(_vmem(), _vmem()),
        scratch_shapes=[pltpu.VMEM((ROWS, XF_LEN), jnp.float32),
                        pltpu.VMEM((PCOLS, HW), jnp.float32)],
    )(x2d, wmat, bconv, w1, b1, w2, b2)
    return f_xi, z


# ----- deterministic parameter init & one-time host-side packing --------------
def init_params():
    keys = jax.random.split(jax.random.PRNGKey(0), 6)
    w_conv = jax.random.normal(keys[0], (K, K, C_IN, C_OUT), jnp.float32) * 0.1
    b_conv = jax.random.normal(keys[1], (1, C_OUT), jnp.float32) * 0.1
    w1 = jax.random.normal(keys[2], (FEAT, HID), jnp.float32) * 0.02
    b1 = jax.random.normal(keys[3], (1, HID), jnp.float32) * 0.02
    w2 = jax.random.normal(keys[4], (HID, PROJ), jnp.float32) * 0.1
    b2 = jax.random.normal(keys[5], (1, PROJ), jnp.float32) * 0.1
    return (w_conv, b_conv, w1, b1, w2, b2)


def prepare_kernel_params(params):
    """One-time packing of weights into the kernel's im2col-friendly layouts."""
    w_conv, b_conv, w1, b1, w2, b2 = params
    # wmat[b*C_OUT + co, t*ROWS + b*C_IN + ci] = w_conv[kh, kw, ci, co], t=kh*K+kw
    w_t = jnp.transpose(w_conv, (3, 0, 1, 2)).reshape(C_OUT, TAPS, C_IN)
    wmat = jnp.zeros((B * C_OUT, PCOLS), jnp.float32)
    for b in range(B):
        for t in range(TAPS):
            col = t * ROWS + b * C_IN
            wmat = wmat.at[b * C_OUT:(b + 1) * C_OUT,
                           col:col + C_IN].set(w_t[:, t, :])
    bconv = jnp.tile(b_conv, (B, 1)).reshape(B * C_OUT, 1)
    return (wmat, bconv, w1, b1, w2, b2)


# ----- pure-JAX reference for correctness check --------------------------------
def reference_forward(x_nchw, params):
    w_conv, b_conv, w1, b1, w2, b2 = params
    w_oihw = jnp.transpose(w_conv, (3, 2, 0, 1))
    y = jax.lax.conv_general_dilated(
        x_nchw, w_oihw, window_strides=(1, 1), padding=((1, 1), (1, 1)),
        dimension_numbers=("NCHW", "OIHW", "NCHW"))
    y = jnp.maximum(y + b_conv.reshape(1, C_OUT, 1, 1), 0.0)
    f = y.reshape(B, FEAT)
    h = jnp.maximum(f @ w1 + b1, 0.0)
    z = h @ w2 + b2
    return f, z


if __name__ == "__main__":
    params = init_params()
    kparams = prepare_kernel_params(params)
    x = jax.random.normal(jax.random.PRNGKey(0), (B, C_IN, H, W), jnp.float32)

    f_xi, z = jax.block_until_ready(simclr_forward(x, kparams))

    f_expect, z_expect = reference_forward(x, params)
    assert f_xi.shape == (B, FEAT) and z.shape == (B, PROJ)
    assert jnp.allclose(f_xi, f_expect, atol=1e-3, rtol=1e-3)
    assert jnp.allclose(z, z_expect, atol=1e-3, rtol=1e-3)

    print("KERNEL_OK")
</pallas_src>

<mosaic_0001>
module attributes {stable_mosaic.version = 11 : i64} {
  func.func @simclr_fused_kernel(%arg0: memref<8x256xf32, #tpu.memory_space<vmem>>, %arg1: memref<16x72xf32, #tpu.memory_space<vmem>>, %arg2: memref<16x1xf32, #tpu.memory_space<vmem>>, %arg3: memref<2048x32xf32, #tpu.memory_space<vmem>>, %arg4: memref<1x32xf32, #tpu.memory_space<vmem>>, %arg5: memref<32x16xf32, #tpu.memory_space<vmem>>, %arg6: memref<1x16xf32, #tpu.memory_space<vmem>>, %arg7: memref<2x2048xf32, #tpu.memory_space<vmem>>, %arg8: memref<2x16xf32, #tpu.memory_space<vmem>>, %arg9: memref<8x512xf32, #tpu.memory_space<vmem>>, %arg10: memref<72x256xf32, #tpu.memory_space<vmem>>) attributes {dimension_semantics = [], scalar_prefetch = 0 : i64, scratch_operands = 2 : i64, tpu.core_type = #tpu.core_type<tc>} {
    %cst = arith.constant 0.000000e+00 : f32
    %0 = vector.broadcast %cst : f32 to vector<8x512xf32>
    %c0 = arith.constant 0 : index
    %c0_0 = arith.constant 0 : index
    %1 = vector.load %arg9[%c0, %c0_0] : memref<8x512xf32, #tpu.memory_space<vmem>>, vector<8x512xf32>
    tpu.vector_store %arg9[%c0, %c0_0], %0 {strides = array<i32>} : memref<8x512xf32, #tpu.memory_space<vmem>>, vector<8x512xf32>,
    %c0_1 = arith.constant 0 : index
    %c0_2 = arith.constant 0 : index
    %2 = vector.load %arg0[%c0_1, %c0_2] : memref<8x256xf32, #tpu.memory_space<vmem>>, vector<8x256xf32>
    %c0_3 = arith.constant 0 : index
    %c128 = arith.constant 128 : index
    %3 = vector.load %arg9[%c0_3, %c128] : memref<8x512xf32, #tpu.memory_space<vmem>>, vector<8x256xf32>
    tpu.vector_store %arg9[%c0_3, %c128], %2 {strides = array<i32>} : memref<8x512xf32, #tpu.memory_space<vmem>>, vector<8x256xf32>,
    %4 = tpu.iota {dimensions = array<i32: 1>} : vector<8x256xi32>
    %c16_i32 = arith.constant 16 : i32
    %c0_i32 = arith.constant 0 : i32
    %5 = arith.cmpi eq, %c16_i32, %c0_i32 : i32
    %c1_i32 = arith.constant 1 : i32
    %6 = arith.select %5, %c1_i32, %c16_i32 : i32
    %7 = vector.broadcast %6 : i32 to vector<8x256xi32>
    %8 = arith.remsi %4, %7 : vector<8x256xi32>
    %c0_i32_4 = arith.constant 0 : i32
    %9 = vector.broadcast %c0_i32_4 : i32 to vector<8x256xi32>
    %10 = arith.cmpi ne, %8, %9 : vector<8x256xi32>
    %c0_i32_5 = arith.constant 0 : i32
    %11 = vector.broadcast %c0_i32_5 : i32 to vector<8x256xi32>
    %12 = arith.cmpi slt, %8, %11 : vector<8x256xi32>
    %c0_i32_6 = arith.constant 0 : i32
    %13 = arith.cmpi slt, %6, %c0_i32_6 : i32
    %14 = vector.broadcast %13 : i1 to vector<8x256xi1>
    %15 = vector.broadcast %14 : vector<8x256xi1> to vector<8x256xi1>
    %16 = arith.xori %12, %15 : vector<8x256xi1>
    %17 = arith.andi %16, %10 : vector<8x256xi1>
    %18 = vector.broadcast %6 : i32 to vector<8x256xi32>
    %19 = arith.addi %8, %18 : vector<8x256xi32>
    %20 = arith.select %17, %19, %8 : vector<8x256xi1>, vector<8x256xi32>
    %c0_7 = arith.constant 0 : index
    %c111 = arith.constant 111 : index
    %21 = vector.load %arg9[%c0_7, %c111] : memref<8x512xf32, #tpu.memory_space<vmem>>, vector<8x256xf32>
    %c1_i32_8 = arith.constant 1 : i32
    %22 = vector.broadcast %c1_i32_8 : i32 to vector<8x256xi32>
    %23 = arith.cmpi sge, %20, %22 : vector<8x256xi32>
    %cst_9 = arith.constant 0.000000e+00 : f32
    %24 = vector.broadcast %cst_9 : f32 to vector<8x256xf32>
    %25 = arith.select %23, %21, %24 : vector<8x256xi1>, vector<8x256xf32>
    %c0_10 = arith.constant 0 : index
    %c0_11 = arith.constant 0 : index
    %26 = vector.load %arg10[%c0_10, %c0_11] : memref<72x256xf32, #tpu.memory_space<vmem>>, vector<8x256xf32>
    tpu.vector_store %arg10[%c0_10, %c0_11], %25 {strides = array<i32>} : memref<72x256xf32, #tpu.memory_space<vmem>>, vector<8x256xf32>,
    %c0_12 = arith.constant 0 : index
    %c112 = arith.constant 112 : index
    %27 = vector.load %arg9[%c0_12, %c112] : memref<8x512xf32, #tpu.memory_space<vmem>>, vector<8x256xf32>
    %c8 = arith.constant 8 : index
    %c0_13 = arith.constant 0 : index
    %28 = vector.load %arg10[%c8, %c0_13] : memref<72x256xf32, #tpu.memory_space<vmem>>, vector<8x256xf32>
    tpu.vector_store %arg10[%c8, %c0_13], %27 {strides = array<i32>} : memref<72x256xf32, #tpu.memory_space<vmem>>, vector<8x256xf32>,
    %c0_14 = arith.constant 0 : index
    %c113 = arith.constant 113 : index
    %29 = vector.load %arg9[%c0_14, %c113] : memref<8x512xf32, #tpu.memory_space<vmem>>, vector<8x256xf32>
    %c14_i32 = arith.constant 14 : i32
    %30 = vector.broadcast %c14_i32 : i32 to vector<8x256xi32>
    %31 = arith.cmpi sle, %20, %30 : vector<8x256xi32>
    %cst_15 = arith.constant 0.000000e+00 : f32
    %32 = vector.broadcast %cst_15 : f32 to vector<8x256xf32>
    %33 = arith.select %31, %29, %32 : vector<8x256xi1>, vector<8x256xf32>
    %c16 = arith.constant 16 : index
    %c0_16 = arith.constant 0 : index
    %34 = vector.load %arg10[%c16, %c0_16] : memref<72x256xf32, #tpu.memory_space<vmem>>, vector<8x256xf32>
    tpu.vector_store %arg10[%c16, %c0_16], %33 {strides = array<i32>} : memref<72x256xf32, #tpu.memory_space<vmem>>, vector<8x256xf32>,
    %c0_17 = arith.constant 0 : index
    %c127 = arith.constant 127 : index
    %35 = vector.load %arg9[%c0_17, %c127] : memref<8x512xf32, #tpu.memory_space<vmem>>, vector<8x256xf32>
    %c1_i32_18 = arith.constant 1 : i32
    %36 = vector.broadcast %c1_i32_18 : i32 to vector<8x256xi32>
    %37 = arith.cmpi sge, %20, %36 : vector<8x256xi32>
    %cst_19 = arith.constant 0.000000e+00 : f32
    %38 = vector.broadcast %cst_19 : f32 to vector<8x256xf32>
    %39 = arith.select %37, %35, %38 : vector<8x256xi1>, vector<8x256xf32>
    %c24 = arith.constant 24 : index
    %c0_20 = arith.constant 0 : index
    %40 = vector.load %arg10[%c24, %c0_20] : memref<72x256xf32, #tpu.memory_space<vmem>>, vector<8x256xf32>
    tpu.vector_store %arg10[%c24, %c0_20], %39 {strides = array<i32>} : memref<72x256xf32, #tpu.memory_space<vmem>>, vector<8x256xf32>,
    %c0_21 = arith.constant 0 : index
    %c128_22 = arith.constant 128 : index
    %41 = vector.load %arg9[%c0_21, %c128_22] : memref<8x512xf32, #tpu.memory_space<vmem>>, vector<8x256xf32>
    %c32 = arith.constant 32 : index
    %c0_23 = arith.constant 0 : index
    %42 = vector.load %arg10[%c32, %c0_23] : memref<72x256xf32, #tpu.memory_space<vmem>>, vector<8x256xf32>
    tpu.vector_store %arg10[%c32, %c0_23], %41 {strides = array<i32>} : memref<72x256xf32, #tpu.memory_space<vmem>>, vector<8x256xf32>,
    %c0_24 = arith.constant 0 : index
    %c129 = arith.constant 129 : index
    %43 = vector.load %arg9[%c0_24, %c129] : memref<8x512xf32, #tpu.memory_space<vmem>>, vector<8x256xf32>
    %c14_i32_25 = arith.constant 14 : i32
    %44 = vector.broadcast %c14_i32_25 : i32 to vector<8x256xi32>
    %45 = arith.cmpi sle, %20, %44 : vector<8x256xi32>
    %cst_26 = arith.constant 0.000000e+00 : f32
    %46 = vector.broadcast %cst_26 : f32 to vector<8x256xf32>
    %47 = arith.select %45, %43, %46 : vector<8x256xi1>, vector<8x256xf32>
    %c40 = arith.constant 40 : index
    %c0_27 = arith.constant 0 : index
    %48 = vector.load %arg10[%c40, %c0_27] : memref<72x256xf32, #tpu.memory_space<vmem>>, vector<8x256xf32>
    tpu.vector_store %arg10[%c40, %c0_27], %47 {strides = array<i32>} : memref<72x256xf32, #tpu.memory_space<vmem>>, vector<8x256xf32>,
    %c0_28 = arith.constant 0 : index
    %c143 = arith.constant 143 : index
    %49 = vector.load %arg9[%c0_28, %c143] : memref<8x512xf32, #tpu.memory_space<vmem>>, vector<8x256xf32>
    %c1_i32_29 = arith.constant 1 : i32
    %50 = vector.broadcast %c1_i32_29 : i32 to vector<8x256xi32>
    %51 = arith.cmpi sge, %20, %50 : vector<8x256xi32>
    %cst_30 = arith.constant 0.000000e+00 : f32
    %52 = vector.broadcast %cst_30 : f32 to vector<8x256xf32>
    %53 = arith.select %51, %49, %52 : vector<8x256xi1>, vector<8x256xf32>
    %c48 = arith.constant 48 : index
    %c0_31 = arith.constant 0 : index
    %54 = vector.load %arg10[%c48, %c0_31] : memref<72x256xf32, #tpu.memory_space<vmem>>, vector<8x256xf32>
    tpu.vector_store %arg10[%c48, %c0_31], %53 {strides = array<i32>} : memref<72x256xf32, #tpu.memory_space<vmem>>, vector<8x256xf32>,
    %c0_32 = arith.constant 0 : index
    %c144 = arith.constant 144 : index
    %55 = vector.load %arg9[%c0_32, %c144] : memref<8x512xf32, #tpu.memory_space<vmem>>, vector<8x256xf32>
    %c56 = arith.constant 56 : index
    %c0_33 = arith.constant 0 : index
    %56 = vector.load %arg10[%c56, %c0_33] : memref<72x256xf32, #tpu.memory_space<vmem>>, vector<8x256xf32>
    tpu.vector_store %arg10[%c56, %c0_33], %55 {strides = array<i32>} : memref<72x256xf32, #tpu.memory_space<vmem>>, vector<8x256xf32>,
    %c0_34 = arith.constant 0 : index
    %c145 = arith.constant 145 : index
    %57 = vector.load %arg9[%c0_34, %c145] : memref<8x512xf32, #tpu.memory_space<vmem>>, vector<8x256xf32>
    %c14_i32_35 = arith.constant 14 : i32
    %58 = vector.broadcast %c14_i32_35 : i32 to vector<8x256xi32>
    %59 = arith.cmpi sle, %20, %58 : vector<8x256xi32>
    %cst_36 = arith.constant 0.000000e+00 : f32
    %60 = vector.broadcast %cst_36 : f32 to vector<8x256xf32>
    %61 = arith.select %59, %57, %60 : vector<8x256xi1>, vector<8x256xf32>
    %c64 = arith.constant 64 : index
    %c0_37 = arith.constant 0 : index
    %62 = vector.load %arg10[%c64, %c0_37] : memref<72x256xf32, #tpu.memory_space<vmem>>, vector<8x256xf32>
    tpu.vector_store %arg10[%c64, %c0_37], %61 {strides = array<i32>} : memref<72x256xf32, #tpu.memory_space<vmem>>, vector<8x256xf32>,
    %c0_38 = arith.constant 0 : index
    %c0_39 = arith.constant 0 : index
    %63 = vector.load %arg1[%c0_38, %c0_39] : memref<16x72xf32, #tpu.memory_space<vmem>>, vector<16x72xf32>
    %c0_40 = arith.constant 0 : index
    %c0_41 = arith.constant 0 : index
    %64 = vector.load %arg10[%c0_40, %c0_41] : memref<72x256xf32, #tpu.memory_space<vmem>>, vector<72x256xf32>
    %cst_42 = arith.constant dense<0.000000e+00> : vector<16x256xf32>
    %65 = tpu.matmul %63, %64, %cst_42 {dimension_numbers = #tpu.dot_dimension_numbers<[1], [0], [0], [1], [0, 0, 1, 1], [], []>} : vector<16x72xf32>, vector<72x256xf32>, vector<16x256xf32> -> vector<16x256xf32>
    %c0_43 = arith.constant 0 : index
    %c0_44 = arith.constant 0 : index
    %66 = vector.load %arg2[%c0_43, %c0_44] : memref<16x1xf32, #tpu.memory_space<vmem>>, vector<16x1xf32>
    %67 = vector.broadcast %66 : vector<16x1xf32> to vector<16x256xf32>
    %68 = arith.addf %65, %67 : vector<16x256xf32>
    %cst_45 = arith.constant 0.000000e+00 : f32
    %69 = vector.broadcast %cst_45 : f32 to vector<16x256xf32>
    %70 = arith.maximumf %68, %69 : vector<16x256xf32>
    %71 = vector.extract_strided_slice %70 {offsets = [0, 0], sizes = [1, 256], strides = [1, 1]} : vector<16x256xf32> to vector<1x256xf32>
    %c0_46 = arith.constant 0 : index
    %c0_47 = arith.constant 0 : index
    %72 = vector.load %arg7[%c0_46, %c0_47] : memref<2x2048xf32, #tpu.memory_space<vmem>>, vector<1x256xf32>
    tpu.vector_store %arg7[%c0_46, %c0_47], %71 {strides = array<i32>} : memref<2x2048xf32, #tpu.memory_space<vmem>>, vector<1x256xf32>,
    %73 = vector.extract_strided_slice %70 {offsets = [1, 0], sizes = [1, 256], strides = [1, 1]} : vector<16x256xf32> to vector<1x256xf32>
    %c0_48 = arith.constant 0 : index
    %c256 = arith.constant 256 : index
    %74 = vector.load %arg7[%c0_48, %c256] : memref<2x2048xf32, #tpu.memory_space<vmem>>, vector<1x256xf32>
    tpu.vector_store %arg7[%c0_48, %c256], %73 {strides = array<i32>} : memref<2x2048xf32, #tpu.memory_space<vmem>>, vector<1x256xf32>,
    %75 = vector.extract_strided_slice %70 {offsets = [2, 0], sizes = [1, 256], strides = [1, 1]} : vector<16x256xf32> to vector<1x256xf32>
    %c0_49 = arith.constant 0 : index
    %c512 = arith.constant 512 : index
    %76 = vector.load %arg7[%c0_49, %c512] : memref<2x2048xf32, #tpu.memory_space<vmem>>, vector<1x256xf32>
    tpu.vector_store %arg7[%c0_49, %c512], %75 {strides = array<i32>} : memref<2x2048xf32, #tpu.memory_space<vmem>>, vector<1x256xf32>,
    %77 = vector.extract_strided_slice %70 {offsets = [3, 0], sizes = [1, 256], strides = [1, 1]} : vector<16x256xf32> to vector<1x256xf32>
    %c0_50 = arith.constant 0 : index
    %c768 = arith.constant 768 : index
    %78 = vector.load %arg7[%c0_50, %c768] : memref<2x2048xf32, #tpu.memory_space<vmem>>, vector<1x256xf32>
    tpu.vector_store %arg7[%c0_50, %c768], %77 {strides = array<i32>} : memref<2x2048xf32, #tpu.memory_space<vmem>>, vector<1x256xf32>,
    %79 = vector.extract_strided_slice %70 {offsets = [4, 0], sizes = [1, 256], strides = [1, 1]} : vector<16x256xf32> to vector<1x256xf32>
    %c0_51 = arith.constant 0 : index
    %c1024 = arith.constant 1024 : index
    %80 = vector.load %arg7[%c0_51, %c1024] : memref<2x2048xf32, #tpu.memory_space<vmem>>, vector<1x256xf32>
    tpu.vector_store %arg7[%c0_51, %c1024], %79 {strides = array<i32>} : memref<2x2048xf32, #tpu.memory_space<vmem>>, vector<1x256xf32>,
    %81 = vector.extract_strided_slice %70 {offsets = [5, 0], sizes = [1, 256], strides = [1, 1]} : vector<16x256xf32> to vector<1x256xf32>
    %c0_52 = arith.constant 0 : index
    %c1280 = arith.constant 1280 : index
    %82 = vector.load %arg7[%c0_52, %c1280] : memref<2x2048xf32, #tpu.memory_space<vmem>>, vector<1x256xf32>
    tpu.vector_store %arg7[%c0_52, %c1280], %81 {strides = array<i32>} : memref<2x2048xf32, #tpu.memory_space<vmem>>, vector<1x256xf32>,
    %83 = vector.extract_strided_slice %70 {offsets = [6, 0], sizes = [1, 256], strides = [1, 1]} : vector<16x256xf32> to vector<1x256xf32>
    %c0_53 = arith.constant 0 : index
    %c1536 = arith.constant 1536 : index
    %84 = vector.load %arg7[%c0_53, %c1536] : memref<2x2048xf32, #tpu.memory_space<vmem>>, vector<1x256xf32>
    tpu.vector_store %arg7[%c0_53, %c1536], %83 {strides = array<i32>} : memref<2x2048xf32, #tpu.memory_space<vmem>>, vector<1x256xf32>,
    %85 = vector.extract_strided_slice %70 {offsets = [7, 0], sizes = [1, 256], strides = [1, 1]} : vector<16x256xf32> to vector<1x256xf32>
    %c0_54 = arith.constant 0 : index
    %c1792 = arith.constant 1792 : index
    %86 = vector.load %arg7[%c0_54, %c1792] : memref<2x2048xf32, #tpu.memory_space<vmem>>, vector<1x256xf32>
    tpu.vector_store %arg7[%c0_54, %c1792], %85 {strides = array<i32>} : memref<2x2048xf32, #tpu.memory_space<vmem>>, vector<1x256xf32>,
    %87 = vector.extract_strided_slice %70 {offsets = [8, 0], sizes = [1, 256], strides = [1, 1]} : vector<16x256xf32> to vector<1x256xf32>
    %c1 = arith.constant 1 : index
    %c0_55 = arith.constant 0 : index
    %88 = vector.load %arg7[%c1, %c0_55] : memref<2x2048xf32, #tpu.memory_space<vmem>>, vector<1x256xf32>
    tpu.vector_store %arg7[%c1, %c0_55], %87 {strides = array<i32>} : memref<2x2048xf32, #tpu.memory_space<vmem>>, vector<1x256xf32>,
    %89 = vector.extract_strided_slice %70 {offsets = [9, 0], sizes = [1, 256], strides = [1, 1]} : vector<16x256xf32> to vector<1x256xf32>
    %c1_56 = arith.constant 1 : index
    %c256_57 = arith.constant 256 : index
    %90 = vector.load %arg7[%c1_56, %c256_57] : memref<2x2048xf32, #tpu.memory_space<vmem>>, vector<1x256xf32>
    tpu.vector_store %arg7[%c1_56, %c256_57], %89 {strides = array<i32>} : memref<2x2048xf32, #tpu.memory_space<vmem>>, vector<1x256xf32>,
    %91 = vector.extract_strided_slice %70 {offsets = [10, 0], sizes = [1, 256], strides = [1, 1]} : vector<16x256xf32> to vector<1x256xf32>
    %c1_58 = arith.constant 1 : index
    %c512_59 = arith.constant 512 : index
    %92 = vector.load %arg7[%c1_58, %c512_59] : memref<2x2048xf32, #tpu.memory_space<vmem>>, vector<1x256xf32>
    tpu.vector_store %arg7[%c1_58, %c512_59], %91 {strides = array<i32>} : memref<2x2048xf32, #tpu.memory_space<vmem>>, vector<1x256xf32>,
    %93 = vector.extract_strided_slice %70 {offsets = [11, 0], sizes = [1, 256], strides = [1, 1]} : vector<16x256xf32> to vector<1x256xf32>
    %c1_60 = arith.constant 1 : index
    %c768_61 = arith.constant 768 : index
    %94 = vector.load %arg7[%c1_60, %c768_61] : memref<2x2048xf32, #tpu.memory_space<vmem>>, vector<1x256xf32>
    tpu.vector_store %arg7[%c1_60, %c768_61], %93 {strides = array<i32>} : memref<2x2048xf32, #tpu.memory_space<vmem>>, vector<1x256xf32>,
    %95 = vector.extract_strided_slice %70 {offsets = [12, 0], sizes = [1, 256], strides = [1, 1]} : vector<16x256xf32> to vector<1x256xf32>
    %c1_62 = arith.constant 1 : index
    %c1024_63 = arith.constant 1024 : index
    %96 = vector.load %arg7[%c1_62, %c1024_63] : memref<2x2048xf32, #tpu.memory_space<vmem>>, vector<1x256xf32>
    tpu.vector_store %arg7[%c1_62, %c1024_63], %95 {strides = array<i32>} : memref<2x2048xf32, #tpu.memory_space<vmem>>, vector<1x256xf32>,
    %97 = vector.extract_strided_slice %70 {offsets = [13, 0], sizes = [1, 256], strides = [1, 1]} : vector<16x256xf32> to vector<1x256xf32>
    %c1_64 = arith.constant 1 : index
    %c1280_65 = arith.constant 1280 : index
    %98 = vector.load %arg7[%c1_64, %c1280_65] : memref<2x2048xf32, #tpu.memory_space<vmem>>, vector<1x256xf32>
    tpu.vector_store %arg7[%c1_64, %c1280_65], %97 {strides = array<i32>} : memref<2x2048xf32, #tpu.memory_space<vmem>>, vector<1x256xf32>,
    %99 = vector.extract_strided_slice %70 {offsets = [14, 0], sizes = [1, 256], strides = [1, 1]} : vector<16x256xf32> to vector<1x256xf32>
    %c1_66 = arith.constant 1 : index
    %c1536_67 = arith.constant 1536 : index
    %100 = vector.load %arg7[%c1_66, %c1536_67] : memref<2x2048xf32, #tpu.memory_space<vmem>>, vector<1x256xf32>
    tpu.vector_store %arg7[%c1_66, %c1536_67], %99 {strides = array<i32>} : memref<2x2048xf32, #tpu.memory_space<vmem>>, vector<1x256xf32>,
    %101 = vector.extract_strided_slice %70 {offsets = [15, 0], sizes = [1, 256], strides = [1, 1]} : vector<16x256xf32> to vector<1x256xf32>
    %c1_68 = arith.constant 1 : index
    %c1792_69 = arith.constant 1792 : index
    %102 = vector.load %arg7[%c1_68, %c1792_69] : memref<2x2048xf32, #tpu.memory_space<vmem>>, vector<1x256xf32>
    tpu.vector_store %arg7[%c1_68, %c1792_69], %101 {strides = array<i32>} : memref<2x2048xf32, #tpu.memory_space<vmem>>, vector<1x256xf32>,
    %c0_70 = arith.constant 0 : index
    %c0_71 = arith.constant 0 : index
    %103 = vector.load %arg7[%c0_70, %c0_71] : memref<2x2048xf32, #tpu.memory_space<vmem>>, vector<2x2048xf32>
    %c0_72 = arith.constant 0 : index
    %c0_73 = arith.constant 0 : index
    %104 = vector.load %arg3[%c0_72, %c0_73] : memref<2048x32xf32, #tpu.memory_space<vmem>>, vector<2048x32xf32>
    %cst_74 = arith.constant dense<0.000000e+00> : vector<2x32xf32>
    %105 = tpu.matmul %103, %104, %cst_74 {dimension_numbers = #tpu.dot_dimension_numbers<[1], [0], [0], [1], [0, 0, 1, 1], [], []>} : vector<2x2048xf32>, vector<2048x32xf32>, vector<2x32xf32> -> vector<2x32xf32>
    %c0_75 = arith.constant 0 : index
    %c0_76 = arith.constant 0 : index
    %106 = vector.load %arg4[%c0_75, %c0_76] : memref<1x32xf32, #tpu.memory_space<vmem>>, vector<1x32xf32>
    %107 = vector.broadcast %106 : vector<1x32xf32> to vector<2x32xf32>
    %108 = arith.addf %105, %107 : vector<2x32xf32>
    %cst_77 = arith.constant 0.000000e+00 : f32
    %109 = vector.broadcast %cst_77 : f32 to vector<2x32xf32>
    %110 = arith.maximumf %108, %109 : vector<2x32xf32>
    %c0_78 = arith.constant 0 : index
    %c0_79 = arith.constant 0 : index
    %111 = vector.load %arg5[%c0_78, %c0_79] : memref<32x16xf32, #tpu.memory_space<vmem>>, vector<32x16xf32>
    %cst_80 = arith.constant dense<0.000000e+00> : vector<2x16xf32>
    %112 = tpu.matmul %110, %111, %cst_80 {dimension_numbers = #tpu.dot_dimension_numbers<[1], [0], [0], [1], [0, 0, 1, 1], [], []>} : vector<2x32xf32>, vector<32x16xf32>, vector<2x16xf32> -> vector<2x16xf32>
    %c0_81 = arith.constant 0 : index
    %c0_82 = arith.constant 0 : index
    %113 = vector.load %arg6[%c0_81, %c0_82] : memref<1x16xf32, #tpu.memory_space<vmem>>, vector<1x16xf32>
    %114 = vector.broadcast %113 : vector<1x16xf32> to vector<2x16xf32>
    %115 = arith.addf %112, %114 : vector<2x16xf32>
    %c0_83 = arith.constant 0 : index
    %c0_84 = arith.constant 0 : index
    %116 = vector.load %arg8[%c0_83, %c0_84] : memref<2x16xf32, #tpu.memory_space<vmem>>, vector<2x16xf32>
    tpu.vector_store %arg8[%c0_83, %c0_84], %115 {strides = array<i32>} : memref<2x16xf32, #tpu.memory_space<vmem>>, vector<2x16xf32>,
    return
  }
}

</mosaic_0001>

<bundles_post_ra>
// kernel: simclr_forward.1
= control target key start
LH: loop header
LB: loop body
LE: loop exit
PB: predicated region body
PF: predicated region fallthrough
CT: control target
= control target key end

     0   :  { %14 = vsyncpa [#allocation5], 0  ;;  %v1230_v1 = vmov 0.0   ;;  %s1231_s29 = smov 111   ;;  %s1232_s10 = smov 112   ;;  %s2239_s0 = inlined_call_operand.vmem [shape: f32[8,256], index: 0, kind: input, shape index: {}]   ;;  %s2240_s1 = inlined_call_operand.vmem [shape: f32[16,72], index: 1, kind: input, shape index: {}]   ;;  %s2241_s2 = inlined_call_operand.vmem [shape: f32[16,1], index: 2, kind: input, shape index: {}]   ;;  %s2242_s3 = inlined_call_operand.vmem [shape: f32[2048,32], index: 3, kind: input, shape index: {}]   ;;  %s2243_s4 = inlined_call_operand.vmem [shape: f32[1,32], index: 4, kind: input, shape index: {}]   ;;  %s2244_s5 = inlined_call_operand.vmem [shape: f32[32,16], index: 5, kind: input, shape index: {}]   ;;  %s2245_s6 = inlined_call_operand.vmem [shape: f32[1,16], index: 6, kind: input, shape index: {}]   ;;  %s2246_s7 = inlined_call_operand.hbm [shape: f32[2,2048], index: 7, kind: output, shape index: {0}]   ;;  %s2247_s8 = inlined_call_operand.hbm [shape: f32[2,16], index: 8, kind: output, shape index: {1}]  }
   0x1   :  { %v1290_v0 = vld [vmem:[%s2239_s0] sm:$0xff]  ;;  %226 = vrot.lane.b32.xlu1 %v1230_v1, %s1231_s29  ;;  %v1296_v2 = vld [vmem:[%s2239_s0 + $0x8] sm:$0xff]  ;;  %207 = vrot.lane.b32.xlu2 %v1230_v1, %s1232_s10 }
   0x2   :  { %222 = vrot.lane.b32.xlu0 %v1290_v0, %s1231_s29 }
   0x3   :  { %15 = vsyncpa [#allocation7], 0  ;;  %v1163_v3 = vpack.i.bf16 %v1296_v2, %v1290_v0  ;;  %s1233_s11 = smov 113   ;;  %s1234_s12 = smov 127   ;;  %v1168_v4 = vpack.i.bf16 %v1290_v0, %v1230_v1  ;;  %v38_v6 = vlaneseq  ;;  %vm228_vm0 = vcmask 908288   ;;  %v257_v37 = vld [vmem:[%s2241_s2] sm:$0xff] }
   0x4   :  { %s1235_s0 = smov 1   ;;  %s1236_s13 = smov 15   ;;  %vm209_vm3 = vcmask 916480   ;;  %vm188_vm4 = vcmask 924672   ;;  %vm167_vm7 = vcmask 1039360   ;;  %v1239_v38 = vmov 0  }
   0x5   :  { %s1237_s14 = smov 16   ;;  %s1238_s15 = smov 17   ;;  %v39_v7 = vand.u32 127, %v38_v6  ;;  %1173 = vset.pattern.permute.xlu1 %v1239_v38  ;;  %1174 = vset.pattern.permute.xlu2 %v1239_v38  ;;  %vm142_vm8 = vcmask 7168   ;;  %v258_v43 = vld [vmem:[%s2241_s2 + $0x8] sm:$0xff]  ;;  %vm121_vm9 = vcmask 121856  }
   0x6   :  { %1175 = vset.pattern.permute.xlu0 %v1239_v38  ;;  %vm100_vm10 = vcmask 130048   ;;  %vm79_vm11 = vcmask 138240   ;;  %v237_v55 = vld [vmem:[%s2240_s1] sm:$0xff]  ;;  %vm269_vm12 = vcmask 588800   ;;  %v238_v60 = vld [vmem:[%s2240_s1 + $0x8] sm:$0xff]  ;;  %vm329_vm13 = vcmask 1040384  }
   0x7   :  { %v40_v9 = vadd.s32 128, %v39_v7  ;;  %v45_v12 = vand.u32 15, %v39_v7  ;;  %vm1374_vm14 = vcmp.lt.s32.totalorder %v38_v6, 256  ;;  %v476_v25 = vld [vmem:[%s2242_s3 + $0xf0] sm:$0xff]  ;;  %v473_v38 = vld [vmem:[%s2242_s3 + $0xd8] sm:$0xff]  ;;  %vm1076_vm15 = vcmask 261120  }
   0x8   :  { %v492_v26 = vld [vmem:[%s2242_s3 + $0x170] sm:$0xff]  ;;  %s1109_s2 = sshll.u32 %s2246_s7, 4  ;;  %s1240_s20 = smov [#allocation4]   ;;  %s1110_s2 = int_to_ptr.hbm [resolvable:$true] %s1109_s2 }
   0x9   :  { %1164 = vrot.lane.b32.xlu1 %v1163_v3, %s1232_s10  ;;  %182 = vrot.lane.b32.xlu2 %v1290_v0, %s1233_s11  ;;  %v52_v13 = vand.u32 15, %v40_v9  ;;  %vm1314_vm1 = vcmp.le.s32.totalorder %v45_v12, 14  ;;  %vm1326_vm5 = vcmp.ge.s32.totalorder %v45_v12, 1  ;;  %s1107_s21 = sshll.u32 %s1240_s20, 4  ;;  %s1241_s23 = smov [#allocation6]   ;;  %s1108_s21 = int_to_ptr.vmem [resolvable:$true] %s1107_s21 }
   0xa   :  { %224 = vrot.lane.b32.xlu0 %v1296_v2, %s1231_s29  ;;  %s1118_s24 = sshll.u32 %s1241_s23, 4  ;;  %s1120_s27 = sshll.u32 %s2247_s8, 4  ;;  %s1119_s24 = int_to_ptr.vmem [resolvable:$true] %s1118_s24  ;;  %s1121_s27 = int_to_ptr.hbm [resolvable:$true] %s1120_s27 }
   0xb   :  { %vm1318_vm2 = vcmp.le.s32.totalorder %v52_v13, 14  ;;  %vm1330_vm6 = vcmp.ge.s32.totalorder %v52_v13, 1 }
  0x11   :  { %186 = vrot.lane.b32.xlu1 %v1230_v1, %s1233_s11  ;;  %161 = vrot.lane.b32.xlu2 %v1290_v0, %s1234_s12 }
  0x12   :  { %184 = vrot.lane.b32.xlu0 %v1296_v2, %s1233_s11 }
  0x19   :  { %165 = vrot.lane.b32.xlu1 %v1230_v1, %s1234_s12  ;;  %136 = vrot.lane.b32.xlu2 %v1230_v1, %s1235_s0 }
  0x1a   :  { %163 = vrot.lane.b32.xlu0 %v1296_v2, %s1234_s12 }
  0x21   :  { %140 = vrot.lane.b32.xlu1 %v1296_v2, %s1235_s0  ;;  %115 = vrot.lane.b32.xlu2 %v1230_v1, %s1236_s13 }
  0x22   :  { %138 = vrot.lane.b32.xlu0 %v1290_v0, %s1235_s0 }
  0x29   :  { %119 = vrot.lane.b32.xlu1 %v1296_v2, %s1236_s13  ;;  %1169 = vrot.lane.b32.xlu2 %v1168_v4, %s1237_s14  ;;  %v637_v4 = vld [vmem:[%s2242_s3 + $0x5f8] sm:$0xff] }
  0x2a   :  { %117 = vrot.lane.b32.xlu0 %v1290_v0, %s1236_s13 }
  0x31   :  { %73 = vrot.lane.b32.xlu1 %v1230_v1, %s1238_s15  ;;  %75 = vrot.lane.b32.xlu2 %v1290_v0, %s1238_s15 }
  0x32   :  { %98 = vrot.lane.b32.xlu0 %v1296_v2, %s1237_s14 }
  0x39   :  { %261 = vperm.xlu1 %1173, %v257_v37   ;;  %266 = vperm.xlu2 %1174, %v258_v43   ;;  %v457_v37 = vld [vmem:[%s2242_s3 + $0x58] sm:$0xff]  ;;  %v488_v43 = vld [vmem:[%s2242_s3 + $0x150] sm:$0xff] }
  0x3a   :  { %77 = vrot.lane.b32.xlu0 %v1296_v2, %s1238_s15 }
  0x5b   :  { %v208_v5 = vpop.permute.xlu2 %207 }
  0x63   :  { %v183_v8 = vpop.permute.xlu2 %182 }
  0x6b   :  { %v162_v14 = vpop.permute.xlu2 %161 }
  0x73   :  { %v227_v10 = vpop.permute.xlu1 %226  ;;  %v137_v27 = vpop.permute.xlu2 %136 }
  0x74   :  { %v223_v11 = vpop.permute.xlu0 %222 }
  0x7b   :  { %v1165_v17 = vpop.permute.xlu1 %1164  ;;  %v116_v36 = vpop.permute.xlu2 %115 }
  0x7c   :  { %v225_v18 = vpop.permute.xlu0 %224  ;;  %v1167_v19 = vunpack.i.h.bf16 %v1165_v17  ;;  %v1166_v20 = vunpack.i.l.bf16 %v1165_v17 }
  0x7d   :  { %v229_v21 = vsel %vm228_vm0, %v223_v11, %v225_v18  ;;  %v230_v22 = vsel %vm228_vm0, %v225_v18, %v227_v10  ;;  %vm1100_vm0 = vcmask 123904  }
  0x7e   :  { %1139 = vmatpush.msk.msra.mxu0 %vm1314_vm1, %v229_v21  ;;  %1145 = vmatpush.msk.msra.mxu1 %vm1318_vm2, %v230_v22  ;;  %v211_v23 = vsel %vm209_vm3, %v1167_v19, %v208_v5  ;;  %v210_v24 = vsel %vm209_vm3, %v1166_v20, %v1167_v19  ;;  %v461_v20 = vld [vmem:[%s2242_s3 + $0x78] sm:$0xff] }
  0x7f   :  { %v477_v21 = vld [vmem:[%s2242_s3 + $0xf8] sm:$0xff]  ;;  %747 = vmatpush.msra.mxu2 %v461_v20  ;;  %v479_v20 = vld [vmem:[%s2242_s3 + $0x108] sm:$0xff] }
  0x80   :  { %307 = vmatpush.msra.mxu1 %v211_v23  ;;  %284 = vmatpush.msra.mxu0 %v210_v24  ;;  %v493_v22 = vld [vmem:[%s2242_s3 + $0x178] sm:$0xff]  ;;  %v460_v24 = vld [vmem:[%s2242_s3 + $0x70] sm:$0xff] }
  0x81   :  { %767 = vmatpush.msra.mxu3 %v477_v21  ;;  %v509_v23 = vld [vmem:[%s2242_s3 + $0x1f8] sm:$0xff]  ;;  %748 = vmatpush.msra.mxu2 %v460_v24  ;;  %v495_v21 = vld [vmem:[%s2242_s3 + $0x188] sm:$0xff]  ;;  %v478_v24 = vld [vmem:[%s2242_s3 + $0x100] sm:$0xff] }
  0x83   :  { %v187_v28 = vpop.permute.xlu1 %186  ;;  %v1170_v44 = vpop.permute.xlu2 %1169  ;;  %768 = vmatpush.msra.mxu3 %v476_v25  ;;  %v494_v25 = vld [vmem:[%s2242_s3 + $0x180] sm:$0xff] }
  0x84   :  { %v185_v29 = vpop.permute.xlu0 %184  ;;  %v1171_v45 = vunpack.i.l.bf16 %v1170_v44  ;;  %v1172_v46 = vunpack.i.h.bf16 %v1170_v44  ;;  %v504_v44 = vld [vmem:[%s2242_s3 + $0x1d0] sm:$0xff] }
  0x85   :  { %v189_v30 = vsel %vm188_vm4, %v183_v8, %v185_v29  ;;  %v190_v31 = vsel %vm188_vm4, %v185_v29, %v187_v28  ;;  %v459_v29 = vld [vmem:[%s2242_s3 + $0x68] sm:$0xff] }
  0x86   :  { %1140 = vmatpush.msk.msra.mxu0 %vm1326_vm5, %v189_v30  ;;  %1146 = vmatpush.msk.msra.mxu1 %vm1330_vm6, %v190_v31  ;;  %v101_v51 = vsel %vm100_vm10, %v1171_v45, %v1172_v46  ;;  %v475_v30 = vld [vmem:[%s2242_s3 + $0xe8] sm:$0xff] }
  0x87   :  { %749 = vmatpush.msra.mxu2 %v459_v29  ;;  %769 = vmatpush.msra.mxu3 %v475_v30  ;;  %v491_v31 = vld [vmem:[%s2242_s3 + $0x168] sm:$0xff]  ;;  %v557_v29 = vld [vmem:[%s2242_s3 + $0x378] sm:$0xff] }
  0x88   :  { %v455_v45 = vld [vmem:[%s2242_s3 + $0x48] sm:$0xff]  ;;  %v573_v30 = vld [vmem:[%s2242_s3 + $0x3f8] sm:$0xff] }
  0x8b   :  { %v166_v32 = vpop.permute.xlu1 %165  ;;  %v76_v52 = vpop.permute.xlu2 %75 }
  0x8c   :  { %v164_v33 = vpop.permute.xlu0 %163 }
  0x8d   :  { %v168_v34 = vsel %vm167_vm7, %v162_v14, %v164_v33  ;;  %v169_v35 = vsel %vm167_vm7, %v164_v33, %v166_v32  ;;  %v507_v32 = vld [vmem:[%s2242_s3 + $0x1e8] sm:$0xff]  ;;  %v458_v33 = vld [vmem:[%s2242_s3 + $0x60] sm:$0xff] }
  0x8e   :  { %1141 = vmatpush.msk.msra.mxu0 %vm1314_vm1, %v168_v34  ;;  %1147 = vmatpush.msk.msra.mxu1 %vm1318_vm2, %v169_v35  ;;  %v474_v34 = vld [vmem:[%s2242_s3 + $0xe0] sm:$0xff] }
  0x8f   :  { %v490_v35 = vld [vmem:[%s2242_s3 + $0x160] sm:$0xff]  ;;  %750 = vmatpush.msra.mxu2 %v458_v33  ;;  %770 = vmatpush.msra.mxu3 %v474_v34  ;;  %v556_v33 = vld [vmem:[%s2242_s3 + $0x370] sm:$0xff] }
  0x90   :  { %287 = vmatpush.msra.mxu0 %v1290_v0  ;;  %310 = vmatpush.msra.mxu1 %v1296_v2  ;;  %v572_v34 = vld [vmem:[%s2242_s3 + $0x3f0] sm:$0xff] }
  0x91   :  { %751 = vmatpush.msra.mxu2 %v457_v37  ;;  %771 = vmatpush.msra.mxu3 %v473_v38  ;;  %v555_v37 = vld [vmem:[%s2242_s3 + $0x368] sm:$0xff] }
  0x92   :  { %v571_v38 = vld [vmem:[%s2242_s3 + $0x3e8] sm:$0xff] }
  0x93   :  { %v141_v39 = vpop.permute.xlu1 %140  ;;  %v267_v9 = vpop.permute.xlu2 %266 }
  0x94   :  { %v139_v40 = vpop.permute.xlu0 %138 }
  0x95   :  { %v143_v41 = vsel %vm142_vm8, %v137_v27, %v139_v40  ;;  %v144_v42 = vsel %vm142_vm8, %v139_v40, %v141_v39  ;;  %v508_v27 = vld [vmem:[%s2242_s3 + $0x1f0] sm:$0xff]  ;;  %v489_v39 = vld [vmem:[%s2242_s3 + $0x158] sm:$0xff] }
  0x96   :  { %1142 = vmatpush.msk.msra.mxu0 %vm1326_vm5, %v143_v41  ;;  %1148 = vmatpush.msk.msra.mxu1 %vm1330_vm6, %v144_v42  ;;  %v505_v40 = vld [vmem:[%s2242_s3 + $0x1d8] sm:$0xff]  ;;  %v456_v41 = vld [vmem:[%s2242_s3 + $0x50] sm:$0xff] }
  0x97   :  { %v472_v42 = vld [vmem:[%s2242_s3 + $0xd0] sm:$0xff]  ;;  %752 = vmatpush.msra.mxu2 %v456_v41  ;;  %v554_v41 = vld [vmem:[%s2242_s3 + $0x360] sm:$0xff] }
  0x98   :  { %772 = vmatpush.msra.mxu3 %v472_v42  ;;  %v570_v42 = vld [vmem:[%s2242_s3 + $0x3e0] sm:$0xff] }
  0x99   :  { %753 = vmatpush.msra.mxu2 %v455_v45  ;;  %v553_v45 = vld [vmem:[%s2242_s3 + $0x358] sm:$0xff] }
  0x9b   :  { %v120_v47 = vpop.permute.xlu1 %119 }
  0x9c   :  { %v118_v48 = vpop.permute.xlu0 %117 }
  0x9d   :  { %v122_v49 = vsel %vm121_vm9, %v116_v36, %v118_v48  ;;  %v123_v50 = vsel %vm121_vm9, %v118_v48, %v120_v47  ;;  %v506_v36 = vld [vmem:[%s2242_s3 + $0x1e0] sm:$0xff]  ;;  %v487_v47 = vld [vmem:[%s2242_s3 + $0x148] sm:$0xff] }
  0x9e   :  { %1143 = vmatpush.msk.msra.mxu0 %vm1314_vm1, %v122_v49  ;;  %1149 = vmatpush.msk.msra.mxu1 %vm1318_vm2, %v123_v50  ;;  %v503_v49 = vld [vmem:[%s2242_s3 + $0x1c8] sm:$0xff]  ;;  %v454_v50 = vld [vmem:[%s2242_s3 + $0x40] sm:$0xff] }
  0x9f   :  { %754 = vmatpush.msra.mxu2 %v454_v50  ;;  %v568_v50 = vld [vmem:[%s2242_s3 + $0x3d0] sm:$0xff] }
  0xa0   :  { %290 = vmatpush.msra.mxu0 %v101_v51  ;;  %v470_v51 = vld [vmem:[%s2242_s3 + $0xc0] sm:$0xff] }
  0xa3   :  { %v74_v54 = vpop.permute.xlu1 %73 }
  0xa4   :  { %v99_v53 = vpop.permute.xlu0 %98  ;;  %v80_v57 = vsel %vm79_vm11, %v74_v54, %v76_v52  ;;  %v453_v54 = vld [vmem:[%s2242_s3 + $0x38] sm:$0xff] }
  0xa5   :  { %v102_v56 = vsel %vm100_vm10, %v1172_v46, %v99_v53  ;;  %1144 = vmatpush.msk.msra.mxu0 %vm1326_vm5, %v80_v57  ;;  %v471_v46 = vld [vmem:[%s2242_s3 + $0xc8] sm:$0xff]  ;;  %v502_v53 = vld [vmem:[%s2242_s3 + $0x1c0] sm:$0xff]  ;;  %755 = vmatpush.msra.mxu2 %v453_v54  ;;  %v501_v57 = vld [vmem:[%s2242_s3 + $0x1b8] sm:$0xff] }
  0xa6   :  { %313 = vmatpush.msra.mxu1 %v102_v56  ;;  %1134 = vmatmul.msk.f32.vlgmr.msra.gmra.mxu0 %vm269_vm12, %v237_v55  ;;  %v485_v56 = vld [vmem:[%s2242_s3 + $0x138] sm:$0xff]  ;;  %v551_v54 = vld [vmem:[%s2242_s3 + $0x348] sm:$0xff] }
  0xa7   :  { %787 = vmatpush.msrb.mxu0 %v493_v22  ;;  %773 = vmatpush.msra.mxu3 %v471_v46  ;;  %v446_v22 = vld [vmem:[%s2242_s3] sm:$0xff]  ;;  %v569_v46 = vld [vmem:[%s2242_s3 + $0x3d8] sm:$0xff] }
  0xa9   :  { %788 = vmatpush.msrb.mxu0 %v492_v26  ;;  %774 = vmatpush.msra.mxu3 %v470_v51  ;;  %v525_v26 = vld [vmem:[%s2242_s3 + $0x278] sm:$0xff] }
  0xab   :  { %v262_v61 = vpop.permute.xlu1 %261  ;;  %789 = vmatpush.msrb.mxu0 %v491_v31  ;;  %v524_v31 = vld [vmem:[%s2242_s3 + $0x270] sm:$0xff] }
  0xac   :  { %v78_v58 = vpop.permute.xlu0 %77 }
  0xad   :  { %v81_v59 = vsel %vm79_vm11, %v76_v52, %v78_v58  ;;  %790 = vmatpush.msrb.mxu0 %v490_v35  ;;  %v486_v52 = vld [vmem:[%s2242_s3 + $0x140] sm:$0xff]  ;;  %v452_v58 = vld [vmem:[%s2242_s3 + $0x30] sm:$0xff]  ;;  %v523_v35 = vld [vmem:[%s2242_s3 + $0x268] sm:$0xff] }
  0xae   :  { %1150 = vmatpush.msk.msra.mxu1 %vm1330_vm6, %v81_v59  ;;  %1135 = vmatmul.msk.f32.gmra.mxu0 %vm269_vm12, %v238_v60  ;;  %v468_v59 = vld [vmem:[%s2242_s3 + $0xb0] sm:$0xff] }
  0xaf   :  { %1136 = vmatmul.msk.f32.vlgmr.msra.gmra.mxu1 %vm269_vm12, %v237_v55  ;;  %791 = vmatpush.msrb.mxu0 %v489_v39  ;;  %v469_v55 = vld [vmem:[%s2242_s3 + $0xb8] sm:$0xff]  ;;  %v522_v39 = vld [vmem:[%s2242_s3 + $0x260] sm:$0xff] }
  0xb0   :  { %807 = vmatpush.msrb.mxu1 %v509_v23  ;;  %775 = vmatpush.msra.mxu3 %v469_v55  ;;  %v462_v23 = vld [vmem:[%s2242_s3 + $0x80] sm:$0xff]  ;;  %v567_v55 = vld [vmem:[%s2242_s3 + $0x3c8] sm:$0xff] }
  0xb1   :  { %792 = vmatpush.msrb.mxu0 %v488_v43  ;;  %756 = vmatpush.msra.mxu2 %v452_v58  ;;  %v521_v43 = vld [vmem:[%s2242_s3 + $0x258] sm:$0xff]  ;;  %v550_v58 = vld [vmem:[%s2242_s3 + $0x340] sm:$0xff] }
  0xb2   :  { %808 = vmatpush.msrb.mxu1 %v508_v27  ;;  %776 = vmatpush.msra.mxu3 %v468_v59  ;;  %v541_v27 = vld [vmem:[%s2242_s3 + $0x2f8] sm:$0xff]  ;;  %v566_v59 = vld [vmem:[%s2242_s3 + $0x3c0] sm:$0xff] }
  0xb3   :  { %793 = vmatpush.msrb.mxu0 %v487_v47  ;;  %v520_v47 = vld [vmem:[%s2242_s3 + $0x250] sm:$0xff] }
  0xb4   :  { %809 = vmatpush.msrb.mxu1 %v507_v32  ;;  %v540_v32 = vld [vmem:[%s2242_s3 + $0x2f0] sm:$0xff] }
  0xb5   :  { %794 = vmatpush.msrb.mxu0 %v486_v52  ;;  %v519_v52 = vld [vmem:[%s2242_s3 + $0x248] sm:$0xff] }
  0xb6   :  { %810 = vmatpush.msrb.mxu1 %v506_v36  ;;  %v539_v36 = vld [vmem:[%s2242_s3 + $0x2e8] sm:$0xff] }
  0xb7   :  { %1137 = vmatmul.msk.f32.gmra.mxu1 %vm269_vm12, %v238_v60  ;;  %795 = vmatpush.msrb.mxu0 %v485_v56  ;;  %v484_v60 = vld [vmem:[%s2242_s3 + $0x130] sm:$0xff]  ;;  %v518_v56 = vld [vmem:[%s2242_s3 + $0x240] sm:$0xff] }
  0xb8   :  { %811 = vmatpush.msrb.mxu1 %v505_v40  ;;  %v538_v40 = vld [vmem:[%s2242_s3 + $0x2e0] sm:$0xff] }
  0xb9   :  { %796 = vmatpush.msrb.mxu0 %v484_v60  ;;  %v517_v60 = vld [vmem:[%s2242_s3 + $0x238] sm:$0xff] }
  0xba   :  { %812 = vmatpush.msrb.mxu1 %v504_v44  ;;  %v537_v44 = vld [vmem:[%s2242_s3 + $0x2d8] sm:$0xff] }
  0xbc   :  { %813 = vmatpush.msrb.mxu1 %v503_v49  ;;  %v552_v49 = vld [vmem:[%s2242_s3 + $0x350] sm:$0xff] }
  0xbe   :  { %814 = vmatpush.msrb.mxu1 %v502_v53  ;;  %v535_v53 = vld [vmem:[%s2242_s3 + $0x2c8] sm:$0xff] }
  0xc0   :  { %815 = vmatpush.msrb.mxu1 %v501_v57  ;;  %v534_v57 = vld [vmem:[%s2242_s3 + $0x2c0] sm:$0xff] }
 0x123   :  { %v293_v62 = vpop.f32.mrf.mxu0 }
 0x124   :  { %v294_v63 = vadd.f32 %v293_v62, %v262_v61  ;;  %v451_v62 = vld [vmem:[%s2242_s3 + $0x28] sm:$0xff] }
 0x125   :  { %757 = vmatpush.msra.mxu2 %v451_v62  ;;  %v549_v62 = vld [vmem:[%s2242_s3 + $0x338] sm:$0xff] }
 0x126   :  { %v1368_v0 = vmax.f32 %v294_v63, 0.0  ;;  %v467_v63 = vld [vmem:[%s2242_s3 + $0xa8] sm:$0xff] }
 0x127   :  { %777 = vmatpush.msra.mxu3 %v467_v63  ;;  %v565_v63 = vld [vmem:[%s2242_s3 + $0x3b8] sm:$0xff] }
 0x128   :  { %337 = vst [vmem:[#allocation1] sm:$0xff] %v1368_v0 }
 0x12b   :  { %v296_v13 = vpop.f32.mrf.mxu0 }
 0x12c   :  { %v316_v1 = vpop.f32.mrf.mxu1  ;;  %v297_v15 = vadd.f32 %v296_v13, %v267_v9  ;;  %v464_v13 = vld [vmem:[%s2242_s3 + $0x90] sm:$0xff] }
 0x12d   :  { %v317_v2 = vadd.f32 %v316_v1, %v262_v61  ;;  %v500_v61 = vld [vmem:[%s2242_s3 + $0x1b0] sm:$0xff]  ;;  %v499_v1 = vld [vmem:[%s2242_s3 + $0x1a8] sm:$0xff] }
 0x12e   :  { %v1399_v17 = vmax.f32 %v297_v15, 0.0  ;;  %816 = vmatpush.msrb.mxu1 %v500_v61  ;;  %v480_v15 = vld [vmem:[%s2242_s3 + $0x110] sm:$0xff]  ;;  %v533_v61 = vld [vmem:[%s2242_s3 + $0x2b8] sm:$0xff] }
 0x12f   :  { %v1371_v3 = vmax.f32 %v317_v2, 0.0 }
 0x130   :  { %817 = vmatpush.msrb.mxu1 %v499_v1  ;;  %v532_v1 = vld [vmem:[%s2242_s3 + $0x2b0] sm:$0xff] }
 0x131   :  { %v328_v5 = vrot.slane %v1371_v3, 7  ;;  %338 = vst [vmem:[#allocation1 + $0x9] sm:$0xff] %v1371_v3 }
 0x133   :  { %v330_v7 = vsel %vm329_vm13, %v1368_v0, %v328_v5  ;;  %v466_v5 = vld [vmem:[%s2242_s3 + $0xa0] sm:$0xff] }
 0x134   :  { %336 = vst.msk [vmem:[#allocation4] ss:$2 sm:$0x3] %vm1374_vm14, %v330_v7  ;;  %v319_v10 = vpop.f32.mrf.mxu1  ;;  %778 = vmatpush.msra.mxu3 %v466_v5  ;;  %v482_v7 = vld [vmem:[%s2242_s3 + $0x120] sm:$0xff]  ;;  %v515_v5 = vld [vmem:[%s2242_s3 + $0x228] sm:$0xff] }
 0x135   :  { %v320_v12 = vadd.f32 %v319_v10, %v267_v9  ;;  %v465_v9 = vld [vmem:[%s2242_s3 + $0x98] sm:$0xff] }
 0x136   :  { %v481_v10 = vld [vmem:[%s2242_s3 + $0x118] sm:$0xff]  ;;  %779 = vmatpush.msra.mxu3 %v465_v9  ;;  %v563_v9 = vld [vmem:[%s2242_s3 + $0x3a8] sm:$0xff] }
 0x137   :  { %v1394_v14 = vmax.f32 %v320_v12, 0.0  ;;  %v448_v12 = vld [vmem:[%s2242_s3 + $0x10] sm:$0xff] }
 0x138   :  { %v340_v8 = vld [vmem:[#allocation1 + $0x1] ss:$9 sm:$0xff]  ;;  %780 = vmatpush.msra.mxu3 %v464_v13 }
 0x139   :  { %344 = vst [vmem:[#allocation1] sm:$0xff] %v1368_v0  ;;  %v388_v16 = vrot.slane %v1394_v14, 7  ;;  %v562_v13 = vld [vmem:[%s2242_s3 + $0x3a0] sm:$0xff] }
 0x13a   :  { %345 = vst [vmem:[#allocation1 + $0x9] sm:$0xff] %v1371_v3 }
 0x13b   :  { %343 = vst.msk [vmem:[#allocation4 + $0x4] ss:$2 sm:$0x3] %vm1374_vm14, %v340_v8  ;;  %v389_v18 = vsel %vm329_vm13, %v1399_v17, %v388_v16  ;;  %v498_v8 = vld [vmem:[%s2242_s3 + $0x1a0] sm:$0xff]  ;;  %v496_v16 = vld [vmem:[%s2242_s3 + $0x190] sm:$0xff] }
 0x13c   :  { %392 = vst.msk [vmem:[#allocation4 + $0x1] ss:$2 sm:$0x3] %vm1374_vm14, %v389_v18  ;;  %818 = vmatpush.msrb.mxu1 %v498_v8  ;;  %v447_v18 = vld [vmem:[%s2242_s3 + $0x8] sm:$0xff] }
 0x141   :  { %v347_v6 = vld [vmem:[#allocation1 + $0x2] ss:$9 sm:$0xff] }
 0x142   :  { %351 = vst [vmem:[#allocation1] sm:$0xff] %v1368_v0 }
 0x143   :  { %352 = vst [vmem:[#allocation1 + $0x9] sm:$0xff] %v1371_v3 }
 0x144   :  { %350 = vst.msk [vmem:[#allocation4 + $0x8] ss:$2 sm:$0x3] %vm1374_vm14, %v347_v6  ;;  %v449_v6 = vld [vmem:[%s2242_s3 + $0x18] sm:$0xff] }
 0x14a   :  { %v354_v11 = vld [vmem:[#allocation1 + $0x3] ss:$9 sm:$0xff] }
 0x14b   :  { %358 = vst [vmem:[#allocation1] sm:$0xff] %v1368_v0 }
 0x14c   :  { %359 = vst [vmem:[#allocation1 + $0x9] sm:$0xff] %v1371_v3 }
 0x14d   :  { %357 = vst.msk [vmem:[#allocation4 + $0xc] ss:$2 sm:$0x3] %vm1374_vm14, %v354_v11  ;;  %v497_v11 = vld [vmem:[%s2242_s3 + $0x198] sm:$0xff] }
 0x14e   :  { %819 = vmatpush.msrb.mxu1 %v497_v11  ;;  %v530_v11 = vld [vmem:[%s2242_s3 + $0x2a0] sm:$0xff] }
 0x150   :  { %820 = vmatpush.msrb.mxu1 %v496_v16  ;;  %v529_v16 = vld [vmem:[%s2242_s3 + $0x298] sm:$0xff] }
 0x152   :  { %821 = vmatpush.msrb.mxu1 %v495_v21  ;;  %v528_v21 = vld [vmem:[%s2242_s3 + $0x290] sm:$0xff] }
 0x153   :  { %v361_v19 = vld [vmem:[#allocation1 + $0x4] ss:$9 sm:$0xff] }
 0x154   :  { %365 = vst [vmem:[#allocation1] sm:$0xff] %v1368_v0  ;;  %822 = vmatpush.msrb.mxu1 %v494_v25  ;;  %v527_v25 = vld [vmem:[%s2242_s3 + $0x288] sm:$0xff] }
 0x155   :  { %366 = vst [vmem:[#allocation1 + $0x9] sm:$0xff] %v1371_v3 }
 0x156   :  { %364 = vst.msk [vmem:[#allocation4 + $0x10] ss:$2 sm:$0x3] %vm1374_vm14, %v361_v19  ;;  %v463_v19 = vld [vmem:[%s2242_s3 + $0x88] sm:$0xff]  ;;  %887 = vmatpush.msra.mxu1 %v573_v30  ;;  %v526_v30 = vld [vmem:[%s2242_s3 + $0x280] sm:$0xff] }
 0x157   :  { %781 = vmatpush.msra.mxu3 %v463_v19  ;;  %v561_v19 = vld [vmem:[%s2242_s3 + $0x398] sm:$0xff] }
 0x158   :  { %888 = vmatpush.msra.mxu1 %v572_v34 }
 0x159   :  { %782 = vmatpush.msra.mxu3 %v462_v23  ;;  %v560_v23 = vld [vmem:[%s2242_s3 + $0x390] sm:$0xff] }
 0x15a   :  { %889 = vmatpush.msra.mxu1 %v571_v38  ;;  %v589_v38 = vld [vmem:[%s2242_s3 + $0x478] sm:$0xff] }
 0x15b   :  { %847 = vmatpush.msrb.mxu3 %v541_v27  ;;  %v559_v27 = vld [vmem:[%s2242_s3 + $0x388] sm:$0xff] }
 0x15c   :  { %v368_v28 = vld [vmem:[#allocation1 + $0x5] ss:$9 sm:$0xff]  ;;  %890 = vmatpush.msra.mxu1 %v570_v42 }
 0x15d   :  { %372 = vst [vmem:[#allocation1] sm:$0xff] %v1368_v0  ;;  %848 = vmatpush.msrb.mxu3 %v540_v32  ;;  %v558_v32 = vld [vmem:[%s2242_s3 + $0x380] sm:$0xff]  ;;  %v588_v42 = vld [vmem:[%s2242_s3 + $0x470] sm:$0xff] }
 0x15e   :  { %373 = vst [vmem:[#allocation1 + $0x9] sm:$0xff] %v1371_v3  ;;  %891 = vmatpush.msra.mxu1 %v569_v46  ;;  %v620_v46 = vld [vmem:[%s2242_s3 + $0x570] sm:$0xff] }
 0x15f   :  { %371 = vst.msk [vmem:[#allocation4 + $0x14] ss:$2 sm:$0x3] %vm1374_vm14, %v368_v28  ;;  %849 = vmatpush.msrb.mxu3 %v539_v36 }
 0x160   :  { %892 = vmatpush.msra.mxu1 %v568_v50 }
 0x161   :  { %850 = vmatpush.msrb.mxu3 %v538_v40 }
 0x162   :  { %893 = vmatpush.msra.mxu1 %v567_v55  ;;  %v619_v55 = vld [vmem:[%s2242_s3 + $0x568] sm:$0xff] }
 0x163   :  { %851 = vmatpush.msrb.mxu3 %v537_v44 }
 0x164   :  { %894 = vmatpush.msra.mxu1 %v566_v59  ;;  %v618_v59 = vld [vmem:[%s2242_s3 + $0x560] sm:$0xff] }
 0x165   :  { %v375_v48 = vld [vmem:[#allocation1 + $0x6] ss:$9 sm:$0xff] }
 0x166   :  { %379 = vst [vmem:[#allocation1] sm:$0xff] %v1368_v0  ;;  %v483_v0 = vld [vmem:[%s2242_s3 + $0x128] sm:$0xff]  ;;  %895 = vmatpush.msra.mxu1 %v565_v63  ;;  %v617_v63 = vld [vmem:[%s2242_s3 + $0x558] sm:$0xff] }
 0x167   :  { %380 = vst [vmem:[#allocation1 + $0x9] sm:$0xff] %v1371_v3  ;;  %797 = vmatpush.msrb.mxu0 %v483_v0  ;;  %v450_v3 = vld [vmem:[%s2242_s3 + $0x20] sm:$0xff]  ;;  %v516_v0 = vld [vmem:[%s2242_s3 + $0x230] sm:$0xff] }
 0x168   :  { %378 = vst.msk [vmem:[#allocation4 + $0x18] ss:$2 sm:$0x3] %vm1374_vm14, %v375_v48  ;;  %758 = vmatpush.msra.mxu2 %v450_v3  ;;  %v536_v48 = vld [vmem:[%s2242_s3 + $0x2d0] sm:$0xff] }
 0x169   :  { %798 = vmatpush.msrb.mxu0 %v482_v7  ;;  %852 = vmatpush.msrb.mxu3 %v536_v48  ;;  %v564_v3 = vld [vmem:[%s2242_s3 + $0x3b0] sm:$0xff]  ;;  %v531_v7 = vld [vmem:[%s2242_s3 + $0x2a8] sm:$0xff] }
 0x16a   :  { %759 = vmatpush.msra.mxu2 %v449_v6  ;;  %v547_v6 = vld [vmem:[%s2242_s3 + $0x328] sm:$0xff]  ;;  %896 = vmatpush.msra.mxu1 %v564_v3  ;;  %v616_v3 = vld [vmem:[%s2242_s3 + $0x550] sm:$0xff] }
 0x16b   :  { %799 = vmatpush.msrb.mxu0 %v481_v10  ;;  %853 = vmatpush.msrb.mxu3 %v535_v53  ;;  %v514_v10 = vld [vmem:[%s2242_s3 + $0x220] sm:$0xff]  ;;  %v603_v53 = vld [vmem:[%s2242_s3 + $0x4e8] sm:$0xff] }
 0x16c   :  { %760 = vmatpush.msra.mxu2 %v448_v12  ;;  %v546_v12 = vld [vmem:[%s2242_s3 + $0x320] sm:$0xff]  ;;  %897 = vmatpush.msra.mxu1 %v563_v9  ;;  %v631_v9 = vld [vmem:[%s2242_s3 + $0x5c8] sm:$0xff] }
 0x16d   :  { %800 = vmatpush.msrb.mxu0 %v480_v15  ;;  %854 = vmatpush.msrb.mxu3 %v534_v57  ;;  %v513_v15 = vld [vmem:[%s2242_s3 + $0x218] sm:$0xff]  ;;  %v586_v57 = vld [vmem:[%s2242_s3 + $0x460] sm:$0xff] }
 0x16e   :  { %v382_v2 = vld [vmem:[#allocation1 + $0x7] ss:$9 sm:$0xff]  ;;  %761 = vmatpush.msra.mxu2 %v447_v18  ;;  %898 = vmatpush.msra.mxu1 %v562_v13 }
 0x16f   :  { %385 = vst.msk [vmem:[#allocation4 + $0x1c] ss:$2 sm:$0x3] %vm1374_vm14, %v382_v2  ;;  %801 = vmatpush.msrb.mxu0 %v479_v20  ;;  %855 = vmatpush.msrb.mxu3 %v533_v61  ;;  %v548_v2 = vld [vmem:[%s2242_s3 + $0x330] sm:$0xff]  ;;  %v545_v18 = vld [vmem:[%s2242_s3 + $0x318] sm:$0xff]  ;;  %v630_v13 = vld [vmem:[%s2242_s3 + $0x5c0] sm:$0xff] }
 0x170   :  { %394 = vst [vmem:[#allocation1 + $0x9] sm:$0xff] %v1394_v14  ;;  %762 = vmatpush.msra.mxu2 %v446_v22  ;;  %v512_v20 = vld [vmem:[%s2242_s3 + $0x210] sm:$0xff]  ;;  %899 = vmatpush.msra.mxu1 %v561_v19  ;;  %v585_v61 = vld [vmem:[%s2242_s3 + $0x458] sm:$0xff] }
 0x171   :  { %393 = vst [vmem:[#allocation1] sm:$0xff] %v1399_v17  ;;  %802 = vmatpush.msrb.mxu0 %v478_v24  ;;  %856 = vmatpush.msrb.mxu3 %v532_v1  ;;  %v544_v22 = vld [vmem:[%s2242_s3 + $0x310] sm:$0xff]  ;;  %v511_v24 = vld [vmem:[%s2242_s3 + $0x208] sm:$0xff]  ;;  %v629_v19 = vld [vmem:[%s2242_s3 + $0x5b8] sm:$0xff] }
 0x172   :  { %827 = vmatpush.msrb.mxu2 %v525_v26  ;;  %v543_v26 = vld [vmem:[%s2242_s3 + $0x308] sm:$0xff]  ;;  %900 = vmatpush.msra.mxu1 %v560_v23  ;;  %v584_v1 = vld [vmem:[%s2242_s3 + $0x450] sm:$0xff] }
 0x173   :  { %867 = vmatpush.msra.mxu0 %v557_v29  ;;  %857 = vmatpush.msrb.mxu3 %v531_v7  ;;  %v510_v29 = vld [vmem:[%s2242_s3 + $0x200] sm:$0xff]  ;;  %v583_v7 = vld [vmem:[%s2242_s3 + $0x448] sm:$0xff]  ;;  %v628_v23 = vld [vmem:[%s2242_s3 + $0x5b0] sm:$0xff] }
 0x174   :  { %828 = vmatpush.msrb.mxu2 %v524_v31  ;;  %v542_v31 = vld [vmem:[%s2242_s3 + $0x300] sm:$0xff]  ;;  %901 = vmatpush.msra.mxu1 %v559_v27  ;;  %v627_v27 = vld [vmem:[%s2242_s3 + $0x5a8] sm:$0xff] }
 0x175   :  { %868 = vmatpush.msra.mxu0 %v556_v33  ;;  %858 = vmatpush.msrb.mxu3 %v530_v11  ;;  %v598_v11 = vld [vmem:[%s2242_s3 + $0x4c0] sm:$0xff] }
 0x176   :  { %829 = vmatpush.msrb.mxu2 %v523_v35  ;;  %902 = vmatpush.msra.mxu1 %v558_v32  ;;  %v577_v32 = vld [vmem:[%s2242_s3 + $0x418] sm:$0xff] }
 0x177   :  { %869 = vmatpush.msra.mxu0 %v555_v37  ;;  %859 = vmatpush.msrb.mxu3 %v529_v16  ;;  %v597_v16 = vld [vmem:[%s2242_s3 + $0x4b8] sm:$0xff] }
 0x178   :  { %v396_v28 = vld [vmem:[#allocation1 + $0x1] ss:$9 sm:$0xff]  ;;  %830 = vmatpush.msrb.mxu2 %v522_v39 }
 0x179   :  { %399 = vst.msk [vmem:[#allocation4 + $0x5] ss:$2 sm:$0x3] %vm1374_vm14, %v396_v28  ;;  %870 = vmatpush.msra.mxu0 %v554_v41  ;;  %860 = vmatpush.msrb.mxu3 %v528_v21  ;;  %v605_v39 = vld [vmem:[%s2242_s3 + $0x4f8] sm:$0xff]  ;;  %v596_v21 = vld [vmem:[%s2242_s3 + $0x4b0] sm:$0xff] }
 0x17a   :  { %400 = vst [vmem:[#allocation1] sm:$0xff] %v1399_v17  ;;  %831 = vmatpush.msrb.mxu2 %v521_v43  ;;  %v604_v43 = vld [vmem:[%s2242_s3 + $0x4f0] sm:$0xff] }
 0x17b   :  { %401 = vst [vmem:[#allocation1 + $0x9] sm:$0xff] %v1394_v14  ;;  %871 = vmatpush.msra.mxu0 %v553_v45  ;;  %861 = vmatpush.msrb.mxu3 %v527_v25  ;;  %v595_v25 = vld [vmem:[%s2242_s3 + $0x4a8] sm:$0xff] }
 0x17c   :  { %832 = vmatpush.msrb.mxu2 %v520_v47  ;;  %v636_v47 = vld [vmem:[%s2242_s3 + $0x5f0] sm:$0xff] }
 0x17d   :  { %872 = vmatpush.msra.mxu0 %v552_v49  ;;  %862 = vmatpush.msrb.mxu3 %v526_v30  ;;  %v610_v30 = vld [vmem:[%s2242_s3 + $0x520] sm:$0xff] }
 0x17e   :  { %833 = vmatpush.msrb.mxu2 %v519_v52  ;;  %v587_v52 = vld [vmem:[%s2242_s3 + $0x468] sm:$0xff] }
 0x17f   :  { %873 = vmatpush.msra.mxu0 %v551_v54 }
 0x180   :  { %834 = vmatpush.msrb.mxu2 %v518_v56  ;;  %v442_v36 = vld [vmem:[#allocation4] sm:$0xff] }
 0x181   :  { %874 = vmatpush.msra.mxu0 %v550_v58  ;;  %v635_v56 = vld [vmem:[%s2242_s3 + $0x5e8] sm:$0xff]  ;;  %v602_v58 = vld [vmem:[%s2242_s3 + $0x4e0] sm:$0xff] }
 0x182   :  { %v403_v51 = vld [vmem:[#allocation1 + $0x2] ss:$9 sm:$0xff]  ;;  %835 = vmatpush.msrb.mxu2 %v517_v60 }
 0x183   :  { %407 = vst [vmem:[#allocation1] sm:$0xff] %v1399_v17  ;;  %875 = vmatpush.msra.mxu0 %v549_v62  ;;  %v634_v60 = vld [vmem:[%s2242_s3 + $0x5e0] sm:$0xff]  ;;  %v601_v62 = vld [vmem:[%s2242_s3 + $0x4d8] sm:$0xff] }
 0x184   :  { %408 = vst [vmem:[#allocation1 + $0x9] sm:$0xff] %v1394_v14  ;;  %836 = vmatpush.msrb.mxu2 %v516_v0  ;;  %v633_v0 = vld [vmem:[%s2242_s3 + $0x5d8] sm:$0xff] }
 0x185   :  { %406 = vst.msk [vmem:[#allocation4 + $0x9] ss:$2 sm:$0x3] %vm1374_vm14, %v403_v51  ;;  %876 = vmatpush.msra.mxu0 %v548_v2  ;;  %v600_v2 = vld [vmem:[%s2242_s3 + $0x4d0] sm:$0xff] }
 0x186   :  { %837 = vmatpush.msrb.mxu2 %v515_v5  ;;  %v632_v5 = vld [vmem:[%s2242_s3 + $0x5d0] sm:$0xff] }
 0x187   :  { %877 = vmatpush.msra.mxu0 %v547_v6  ;;  %v615_v6 = vld [vmem:[%s2242_s3 + $0x548] sm:$0xff] }
 0x188   :  { %838 = vmatpush.msrb.mxu2 %v514_v10  ;;  %v582_v10 = vld [vmem:[%s2242_s3 + $0x440] sm:$0xff] }
 0x189   :  { %878 = vmatpush.msra.mxu0 %v546_v12  ;;  %v614_v12 = vld [vmem:[%s2242_s3 + $0x540] sm:$0xff] }
 0x18a   :  { %839 = vmatpush.msrb.mxu2 %v513_v15  ;;  %v581_v15 = vld [vmem:[%s2242_s3 + $0x438] sm:$0xff] }
 0x18b   :  { %v410_v8 = vld [vmem:[#allocation1 + $0x3] ss:$9 sm:$0xff]  ;;  %879 = vmatpush.msra.mxu0 %v545_v18 }
 0x18c   :  { %414 = vst [vmem:[#allocation1] sm:$0xff] %v1399_v17  ;;  %840 = vmatpush.msrb.mxu2 %v512_v20  ;;  %v613_v18 = vld [vmem:[%s2242_s3 + $0x538] sm:$0xff]  ;;  %v580_v20 = vld [vmem:[%s2242_s3 + $0x430] sm:$0xff] }
 0x18d   :  { %415 = vst [vmem:[#allocation1 + $0x9] sm:$0xff] %v1394_v14  ;;  %880 = vmatpush.msra.mxu0 %v544_v22  ;;  %v612_v22 = vld [vmem:[%s2242_s3 + $0x530] sm:$0xff] }
 0x18e   :  { %413 = vst.msk [vmem:[#allocation4 + $0xd] ss:$2 sm:$0x3] %vm1374_vm14, %v410_v8  ;;  %841 = vmatpush.msrb.mxu2 %v511_v24  ;;  %v599_v8 = vld [vmem:[%s2242_s3 + $0x4c8] sm:$0xff] }
 0x18f   :  { %881 = vmatpush.msra.mxu0 %v543_v26  ;;  %v579_v24 = vld [vmem:[%s2242_s3 + $0x428] sm:$0xff] }
 0x190   :  { %842 = vmatpush.msrb.mxu2 %v510_v29  ;;  %v611_v26 = vld [vmem:[%s2242_s3 + $0x528] sm:$0xff]  ;;  %v594_v29 = vld [vmem:[%s2242_s3 + $0x4a0] sm:$0xff] }
 0x191   :  { %882 = vmatpush.msra.mxu0 %v542_v31  ;;  %v626_v31 = vld [vmem:[%s2242_s3 + $0x5a0] sm:$0xff] }
 0x194   :  { %v417_v28 = vld [vmem:[#allocation1 + $0x4] ss:$9 sm:$0xff] }
 0x195   :  { %420 = vst.msk [vmem:[#allocation4 + $0x11] ss:$2 sm:$0x3] %vm1374_vm14, %v417_v28  ;;  %v443_v37 = vld [vmem:[#allocation4 + $0x8] sm:$0xff]  ;;  %v578_v28 = vld [vmem:[%s2242_s3 + $0x420] sm:$0xff] }
 0x196   :  { %421 = vst [vmem:[#allocation1] sm:$0xff] %v1399_v17 }
 0x197   :  { %422 = vst [vmem:[#allocation1 + $0x9] sm:$0xff] %v1394_v14 }
 0x19e   :  { %v424_v33 = vld [vmem:[#allocation1 + $0x5] ss:$9 sm:$0xff] }
 0x19f   :  { %427 = vst.msk [vmem:[#allocation4 + $0x15] ss:$2 sm:$0x3] %vm1374_vm14, %v424_v33  ;;  %v593_v33 = vld [vmem:[%s2242_s3 + $0x498] sm:$0xff] }
 0x1a0   :  { %428 = vst [vmem:[#allocation1] sm:$0xff] %v1399_v17 }
 0x1a1   :  { %429 = vst [vmem:[#allocation1 + $0x9] sm:$0xff] %v1394_v14 }
 0x1a6   :  { %v444_v54 = vld [vmem:[#allocation4 + $0x10] sm:$0xff] }
 0x1a8   :  { %v431_v34 = vld [vmem:[#allocation1 + $0x6] ss:$9 sm:$0xff] }
 0x1a9   :  { %434 = vst.msk [vmem:[#allocation4 + $0x19] ss:$2 sm:$0x3] %vm1374_vm14, %v431_v34  ;;  %v609_v34 = vld [vmem:[%s2242_s3 + $0x518] sm:$0xff] }
 0x1aa   :  { %435 = vst [vmem:[#allocation1] sm:$0xff] %v1399_v17 }
 0x1ab   :  { %436 = vst [vmem:[#allocation1 + $0x9] sm:$0xff] %v1394_v14  ;;  %v621_v14 = vld [vmem:[%s2242_s3 + $0x578] sm:$0xff] }
 0x1b2   :  { %v438_v35 = vld [vmem:[#allocation1 + $0x7] ss:$9 sm:$0xff] }
 0x1b3   :  { %441 = vst.msk [vmem:[#allocation4 + $0x1d] ss:$2 sm:$0x3] %vm1374_vm14, %v438_v35  ;;  %v625_v35 = vld [vmem:[%s2242_s3 + $0x598] sm:$0xff] }
 0x1b4   :  { %710 = vst [vmem:[#allocation1] ss:$4 sm:$0xff] %v442_v36  ;;  %v576_v36 = vld [vmem:[%s2242_s3 + $0x410] sm:$0xff]  ;;  %1112 = dma.vmem_to_hbm [thread:$0]  %s1108_s21, 512, %s1110_s2, [#allocation5]  }
 0x1b5   :  { %712 = vst [vmem:[#allocation1 + $0x20] ss:$4 sm:$0xff] %v443_v37  ;;  %v592_v37 = vld [vmem:[%s2242_s3 + $0x490] sm:$0xff] }
 0x1ba   :  { %v445_v40 = vld [vmem:[#allocation4 + $0x18] sm:$0xff] }
 0x1bb   :  { %v713_v17 = vld.sshfl [vmem:[#allocation1] sm:$0xff pattern:$0x73625140]  ;;  %v714_v41 = vld.sshfl [vmem:[#allocation1 + $0x8] sm:$0xff pattern:$0x73625140] }
 0x1bc   :  { %763 = vmatmul.f32.vlgmr.msra.gmra.mxu2 %v713_v17  ;;  %783 = vmatmul.f32.vlgmr.msra.gmra.mxu3 %v714_v41  ;;  %v715_v44 = vld.sshfl [vmem:[#allocation1 + $0x10] sm:$0xff pattern:$0x73625140]  ;;  %v716_v45 = vld.sshfl [vmem:[#allocation1 + $0x18] sm:$0xff pattern:$0x73625140] }
 0x1bd   :  { %803 = vmatmul.f32.vlgmr.msrb.gmra.mxu0 %v715_v44  ;;  %823 = vmatmul.f32.vlgmr.msrb.gmra.mxu1 %v716_v45  ;;  %v717_v48 = vld.sshfl [vmem:[#allocation1 + $0x20] sm:$0xff pattern:$0x73625140]  ;;  %v718_v49 = vld.sshfl [vmem:[#allocation1 + $0x28] sm:$0xff pattern:$0x73625140] }
 0x1be   :  { %907 = vmatpush.msra.mxu2 %v589_v38  ;;  %927 = vmatpush.msra.mxu3 %v605_v39  ;;  %v719_v50 = vld.sshfl [vmem:[#allocation1 + $0x30] sm:$0xff pattern:$0x73625140]  ;;  %v720_v51 = vld.sshfl [vmem:[#allocation1 + $0x38] sm:$0xff pattern:$0x73625140] }
 0x1bf   :  { %947 = vmatpush.msrb.mxu0 %v621_v14  ;;  %967 = vmatpush.msrb.mxu1 %v637_v4  ;;  %722 = vst [vmem:[#allocation1 + $0x20] ss:$4 sm:$0xff] %v445_v40  ;;  %v608_v38 = vld [vmem:[%s2242_s3 + $0x510] sm:$0xff]  ;;  %v575_v40 = vld [vmem:[%s2242_s3 + $0x408] sm:$0xff]  ;;  %v574_v41 = vld [vmem:[%s2242_s3 + $0x400] sm:$0xff] }
 0x1c0   :  { %908 = vmatpush.msra.mxu2 %v588_v42  ;;  %928 = vmatpush.msra.mxu3 %v604_v43  ;;  %721 = vst [vmem:[#allocation1] ss:$4 sm:$0xff] %v444_v54  ;;  %v624_v39 = vld [vmem:[%s2242_s3 + $0x590] sm:$0xff]  ;;  %v591_v14 = vld [vmem:[%s2242_s3 + $0x488] sm:$0xff]  ;;  %v590_v42 = vld [vmem:[%s2242_s3 + $0x480] sm:$0xff] }
 0x1c1   :  { %948 = vmatpush.msrb.mxu0 %v620_v46  ;;  %968 = vmatpush.msrb.mxu1 %v636_v47  ;;  %v607_v4 = vld [vmem:[%s2242_s3 + $0x508] sm:$0xff]  ;;  %v606_v43 = vld [vmem:[%s2242_s3 + $0x500] sm:$0xff]  ;;  %v653_v45 = vld [vmem:[%s2242_s3 + $0x678] sm:$0xff] }
 0x1c2   :  { %909 = vmatpush.msra.mxu2 %v587_v52  ;;  %929 = vmatpush.msra.mxu3 %v603_v53  ;;  %v623_v17 = vld [vmem:[%s2242_s3 + $0x588] sm:$0xff]  ;;  %v622_v44 = vld [vmem:[%s2242_s3 + $0x580] sm:$0xff]  ;;  %v669_v46 = vld [vmem:[%s2242_s3 + $0x6f8] sm:$0xff] }
 0x1c3   :  { %949 = vmatpush.msrb.mxu0 %v619_v55  ;;  %969 = vmatpush.msrb.mxu1 %v635_v56  ;;  %v685_v47 = vld [vmem:[%s2242_s3 + $0x778] sm:$0xff]  ;;  %v652_v53 = vld [vmem:[%s2242_s3 + $0x670] sm:$0xff] }
 0x1c4   :  { %910 = vmatpush.msra.mxu2 %v586_v57  ;;  %930 = vmatpush.msra.mxu3 %v602_v58  ;;  %v668_v54 = vld [vmem:[%s2242_s3 + $0x6f0] sm:$0xff]  ;;  %v651_v57 = vld [vmem:[%s2242_s3 + $0x668] sm:$0xff] }
 0x1c5   :  { %950 = vmatpush.msrb.mxu0 %v618_v59  ;;  %970 = vmatpush.msrb.mxu1 %v634_v60  ;;  %v684_v55 = vld [vmem:[%s2242_s3 + $0x770] sm:$0xff]  ;;  %v667_v58 = vld [vmem:[%s2242_s3 + $0x6e8] sm:$0xff] }
 0x1c6   :  { %843 = vmatmul.f32.vlgmr.msrb.gmra.mxu2 %v717_v48  ;;  %863 = vmatmul.f32.vlgmr.msrb.gmra.mxu3 %v718_v49  ;;  %v701_v48 = vld [vmem:[%s2242_s3 + $0x7f8] sm:$0xff]  ;;  %v700_v56 = vld [vmem:[%s2242_s3 + $0x7f0] sm:$0xff]  ;;  %v683_v59 = vld [vmem:[%s2242_s3 + $0x768] sm:$0xff] }
 0x1c7   :  { %883 = vmatmul.f32.vlgmr.msra.gmra.mxu0 %v719_v50  ;;  %903 = vmatmul.f32.vlgmr.msra.gmra.mxu1 %v720_v51  ;;  %v723_v49 = vld.sshfl [vmem:[#allocation1] sm:$0xff pattern:$0x73625140]  ;;  %v724_v50 = vld.sshfl [vmem:[#allocation1 + $0x8] sm:$0xff pattern:$0x73625140] }
 0x1c8   :  { %911 = vmatpush.msra.mxu2 %v585_v61  ;;  %931 = vmatpush.msra.mxu3 %v601_v62  ;;  %v725_v51 = vld.sshfl [vmem:[#allocation1 + $0x10] sm:$0xff pattern:$0x73625140]  ;;  %v726_v52 = vld.sshfl [vmem:[#allocation1 + $0x18] sm:$0xff pattern:$0x73625140] }
 0x1c9   :  { %951 = vmatpush.msrb.mxu0 %v617_v63  ;;  %971 = vmatpush.msrb.mxu1 %v633_v0  ;;  %v699_v60 = vld [vmem:[%s2242_s3 + $0x7e8] sm:$0xff]  ;;  %v650_v61 = vld [vmem:[%s2242_s3 + $0x660] sm:$0xff] }
 0x1ca   :  { %912 = vmatpush.msra.mxu2 %v584_v1  ;;  %932 = vmatpush.msra.mxu3 %v600_v2  ;;  %v666_v62 = vld [vmem:[%s2242_s3 + $0x6e0] sm:$0xff]  ;;  %v649_v1 = vld [vmem:[%s2242_s3 + $0x658] sm:$0xff] }
 0x1cb   :  { %952 = vmatpush.msrb.mxu0 %v616_v3  ;;  %972 = vmatpush.msrb.mxu1 %v632_v5  ;;  %v682_v63 = vld [vmem:[%s2242_s3 + $0x760] sm:$0xff]  ;;  %v665_v2 = vld [vmem:[%s2242_s3 + $0x6d8] sm:$0xff] }
 0x1cc   :  { %913 = vmatpush.msra.mxu2 %v583_v7  ;;  %933 = vmatpush.msra.mxu3 %v599_v8  ;;  %v698_v0 = vld [vmem:[%s2242_s3 + $0x7e0] sm:$0xff]  ;;  %v681_v3 = vld [vmem:[%s2242_s3 + $0x758] sm:$0xff]  ;;  %v648_v7 = vld [vmem:[%s2242_s3 + $0x650] sm:$0xff] }
 0x1cd   :  { %953 = vmatpush.msrb.mxu0 %v615_v6  ;;  %973 = vmatpush.msrb.mxu1 %v631_v9  ;;  %v697_v5 = vld [vmem:[%s2242_s3 + $0x7d8] sm:$0xff]  ;;  %v664_v8 = vld [vmem:[%s2242_s3 + $0x6d0] sm:$0xff] }
 0x1ce   :  { %914 = vmatpush.msra.mxu2 %v582_v10  ;;  %934 = vmatpush.msra.mxu3 %v598_v11  ;;  %v680_v6 = vld [vmem:[%s2242_s3 + $0x750] sm:$0xff]  ;;  %v647_v10 = vld [vmem:[%s2242_s3 + $0x648] sm:$0xff] }
 0x1cf   :  { %954 = vmatpush.msrb.mxu0 %v614_v12  ;;  %974 = vmatpush.msrb.mxu1 %v630_v13  ;;  %v696_v9 = vld [vmem:[%s2242_s3 + $0x7d0] sm:$0xff]  ;;  %v663_v11 = vld [vmem:[%s2242_s3 + $0x6c8] sm:$0xff] }
 0x1d0   :  { %915 = vmatpush.msra.mxu2 %v581_v15  ;;  %935 = vmatpush.msra.mxu3 %v597_v16  ;;  %v679_v12 = vld [vmem:[%s2242_s3 + $0x748] sm:$0xff]  ;;  %v646_v15 = vld [vmem:[%s2242_s3 + $0x640] sm:$0xff] }
 0x1d1   :  { %955 = vmatpush.msrb.mxu0 %v613_v18  ;;  %975 = vmatpush.msrb.mxu1 %v629_v19  ;;  %v695_v13 = vld [vmem:[%s2242_s3 + $0x7c8] sm:$0xff]  ;;  %v662_v16 = vld [vmem:[%s2242_s3 + $0x6c0] sm:$0xff] }
 0x1d2   :  { %916 = vmatpush.msra.mxu2 %v580_v20  ;;  %936 = vmatpush.msra.mxu3 %v596_v21  ;;  %v678_v18 = vld [vmem:[%s2242_s3 + $0x740] sm:$0xff]  ;;  %v645_v20 = vld [vmem:[%s2242_s3 + $0x638] sm:$0xff] }
 0x1d3   :  { %956 = vmatpush.msrb.mxu0 %v612_v22  ;;  %976 = vmatpush.msrb.mxu1 %v628_v23  ;;  %v694_v19 = vld [vmem:[%s2242_s3 + $0x7c0] sm:$0xff]  ;;  %v661_v21 = vld [vmem:[%s2242_s3 + $0x6b8] sm:$0xff] }
 0x1d4   :  { %917 = vmatpush.msra.mxu2 %v579_v24  ;;  %937 = vmatpush.msra.mxu3 %v595_v25  ;;  %v677_v22 = vld [vmem:[%s2242_s3 + $0x738] sm:$0xff]  ;;  %v644_v24 = vld [vmem:[%s2242_s3 + $0x630] sm:$0xff] }
 0x1d5   :  { %957 = vmatpush.msrb.mxu0 %v611_v26  ;;  %977 = vmatpush.msrb.mxu1 %v627_v27  ;;  %v693_v23 = vld [vmem:[%s2242_s3 + $0x7b8] sm:$0xff]  ;;  %v660_v25 = vld [vmem:[%s2242_s3 + $0x6b0] sm:$0xff] }
 0x1d6   :  { %918 = vmatpush.msra.mxu2 %v578_v28  ;;  %938 = vmatpush.msra.mxu3 %v594_v29  ;;  %v676_v26 = vld [vmem:[%s2242_s3 + $0x730] sm:$0xff]  ;;  %v643_v28 = vld [vmem:[%s2242_s3 + $0x628] sm:$0xff] }
 0x1d7   :  { %958 = vmatpush.msrb.mxu0 %v610_v30  ;;  %978 = vmatpush.msrb.mxu1 %v626_v31  ;;  %v692_v27 = vld [vmem:[%s2242_s3 + $0x7b0] sm:$0xff]  ;;  %v659_v29 = vld [vmem:[%s2242_s3 + $0x6a8] sm:$0xff] }
 0x1d8   :  { %919 = vmatpush.msra.mxu2 %v577_v32  ;;  %939 = vmatpush.msra.mxu3 %v593_v33  ;;  %v675_v30 = vld [vmem:[%s2242_s3 + $0x728] sm:$0xff]  ;;  %v642_v32 = vld [vmem:[%s2242_s3 + $0x620] sm:$0xff] }
 0x1d9   :  { %959 = vmatpush.msrb.mxu0 %v609_v34  ;;  %979 = vmatpush.msrb.mxu1 %v625_v35  ;;  %v691_v31 = vld [vmem:[%s2242_s3 + $0x7a8] sm:$0xff]  ;;  %v658_v33 = vld [vmem:[%s2242_s3 + $0x6a0] sm:$0xff] }
 0x1da   :  { %920 = vmatpush.msra.mxu2 %v576_v36  ;;  %940 = vmatpush.msra.mxu3 %v592_v37  ;;  %v674_v34 = vld [vmem:[%s2242_s3 + $0x720] sm:$0xff]  ;;  %v641_v36 = vld [vmem:[%s2242_s3 + $0x618] sm:$0xff] }
 0x1db   :  { %960 = vmatpush.msrb.mxu0 %v608_v38  ;;  %980 = vmatpush.msrb.mxu1 %v624_v39  ;;  %v690_v35 = vld [vmem:[%s2242_s3 + $0x7a0] sm:$0xff]  ;;  %v657_v37 = vld [vmem:[%s2242_s3 + $0x698] sm:$0xff] }
 0x1dc   :  { %921 = vmatpush.msra.mxu2 %v575_v40  ;;  %941 = vmatpush.msra.mxu3 %v591_v14  ;;  %v673_v38 = vld [vmem:[%s2242_s3 + $0x718] sm:$0xff]  ;;  %v640_v40 = vld [vmem:[%s2242_s3 + $0x610] sm:$0xff] }
 0x1dd   :  { %961 = vmatpush.msrb.mxu0 %v607_v4  ;;  %981 = vmatpush.msrb.mxu1 %v623_v17  ;;  %v689_v39 = vld [vmem:[%s2242_s3 + $0x798] sm:$0xff]  ;;  %v656_v14 = vld [vmem:[%s2242_s3 + $0x690] sm:$0xff] }
 0x1de   :  { %922 = vmatpush.msra.mxu2 %v574_v41  ;;  %942 = vmatpush.msra.mxu3 %v590_v42  ;;  %v672_v4 = vld [vmem:[%s2242_s3 + $0x710] sm:$0xff]  ;;  %v639_v41 = vld [vmem:[%s2242_s3 + $0x608] sm:$0xff] }
 0x1df   :  { %962 = vmatpush.msrb.mxu0 %v606_v43  ;;  %982 = vmatpush.msrb.mxu1 %v622_v44  ;;  %v688_v17 = vld [vmem:[%s2242_s3 + $0x790] sm:$0xff]  ;;  %v655_v42 = vld [vmem:[%s2242_s3 + $0x688] sm:$0xff] }
 0x1e0   :  { %923 = vmatmul.f32.vlgmr.msra.gmra.mxu2 %v723_v49  ;;  %943 = vmatmul.f32.vlgmr.msra.gmra.mxu3 %v724_v50  ;;  %v671_v43 = vld [vmem:[%s2242_s3 + $0x708] sm:$0xff]  ;;  %v727_v49 = vld.sshfl [vmem:[#allocation1 + $0x20] sm:$0xff pattern:$0x73625140] }
 0x1e1   :  { %963 = vmatmul.f32.vlgmr.msrb.gmra.mxu0 %v725_v51  ;;  %983 = vmatmul.f32.vlgmr.msrb.gmra.mxu1 %v726_v52  ;;  %v687_v44 = vld [vmem:[%s2242_s3 + $0x788] sm:$0xff]  ;;  %v729_v51 = vld.sshfl [vmem:[#allocation1 + $0x30] sm:$0xff pattern:$0x73625140] }
 0x1e2   :  { %987 = vmatpush.msrb.mxu2 %v653_v45  ;;  %1007 = vmatpush.msrb.mxu3 %v669_v46  ;;  %v638_v45 = vld [vmem:[%s2242_s3 + $0x600] sm:$0xff]  ;;  %v728_v50 = vld.sshfl [vmem:[#allocation1 + $0x28] sm:$0xff pattern:$0x73625140] }
 0x1e3   :  { %1027 = vmatpush.msra.mxu0 %v685_v47  ;;  %1047 = vmatpush.msra.mxu1 %v701_v48  ;;  %v654_v46 = vld [vmem:[%s2242_s3 + $0x680] sm:$0xff]  ;;  %v730_v52 = vld.sshfl [vmem:[#allocation1 + $0x38] sm:$0xff pattern:$0x73625140] }
 0x1e4   :  { %988 = vmatpush.msrb.mxu2 %v652_v53  ;;  %1008 = vmatpush.msrb.mxu3 %v668_v54  ;;  %v670_v47 = vld [vmem:[%s2242_s3 + $0x700] sm:$0xff] }
 0x1e5   :  { %1028 = vmatpush.msra.mxu0 %v684_v55  ;;  %1048 = vmatpush.msra.mxu1 %v700_v56  ;;  %v686_v48 = vld [vmem:[%s2242_s3 + $0x780] sm:$0xff] }
 0x1e6   :  { %989 = vmatpush.msrb.mxu2 %v651_v57  ;;  %1009 = vmatpush.msrb.mxu3 %v667_v58  ;;  %v1176_v53 = vld [vmem:[%s2243_s4] ss:$0 sm:$0xff] }
 0x1e7   :  { %1029 = vmatpush.msra.mxu0 %v683_v59  ;;  %1049 = vmatpush.msra.mxu1 %v699_v60 }
 0x1e8   :  { %990 = vmatpush.msrb.mxu2 %v650_v61  ;;  %1010 = vmatpush.msrb.mxu3 %v666_v62 }
 0x1e9   :  { %1030 = vmatpush.msra.mxu0 %v682_v63  ;;  %1050 = vmatpush.msra.mxu1 %v698_v0 }
 0x1ea   :  { %991 = vmatpush.msrb.mxu2 %v649_v1  ;;  %1011 = vmatpush.msrb.mxu3 %v665_v2  ;;  %v1071_v2 = vld [vmem:[%s2244_s5 + $0x18] sm:$0xff] }
 0x1eb   :  { %1031 = vmatpush.msra.mxu0 %v681_v3  ;;  %1051 = vmatpush.msra.mxu1 %v697_v5  ;;  %v1070_v3 = vld [vmem:[%s2244_s5 + $0x10] sm:$0xff]  ;;  %v1069_v5 = vld [vmem:[%s2244_s5 + $0x8] sm:$0xff] }
 0x1ec   :  { %992 = vmatpush.msrb.mxu2 %v648_v7  ;;  %1012 = vmatpush.msrb.mxu3 %v664_v8 }
 0x1ed   :  { %1032 = vmatpush.msra.mxu0 %v680_v6  ;;  %1052 = vmatpush.msra.mxu1 %v696_v9  ;;  %v1068_v6 = vld [vmem:[%s2244_s5] sm:$0xff] }
 0x1ee   :  { %993 = vmatpush.msrb.mxu2 %v647_v10  ;;  %1013 = vmatpush.msrb.mxu3 %v663_v11 }
 0x1ef   :  { %1033 = vmatpush.msra.mxu0 %v679_v12  ;;  %1053 = vmatpush.msra.mxu1 %v695_v13 }
 0x1f0   :  { %994 = vmatpush.msrb.mxu2 %v646_v15  ;;  %1014 = vmatpush.msrb.mxu3 %v662_v16 }
 0x1f1   :  { %1034 = vmatpush.msra.mxu0 %v678_v18  ;;  %1054 = vmatpush.msra.mxu1 %v694_v19 }
 0x1f2   :  { %995 = vmatpush.msrb.mxu2 %v645_v20  ;;  %1015 = vmatpush.msrb.mxu3 %v661_v21 }
 0x1f3   :  { %1035 = vmatpush.msra.mxu0 %v677_v22  ;;  %1055 = vmatpush.msra.mxu1 %v693_v23 }
 0x1f4   :  { %996 = vmatpush.msrb.mxu2 %v644_v24  ;;  %1016 = vmatpush.msrb.mxu3 %v660_v25 }
 0x1f5   :  { %1036 = vmatpush.msra.mxu0 %v676_v26  ;;  %1056 = vmatpush.msra.mxu1 %v692_v27 }
 0x1f6   :  { %997 = vmatpush.msrb.mxu2 %v643_v28  ;;  %1017 = vmatpush.msrb.mxu3 %v659_v29 }
 0x1f7   :  { %1037 = vmatpush.msra.mxu0 %v675_v30  ;;  %1057 = vmatpush.msra.mxu1 %v691_v31  ;;  %v1177_v30 = vld [vmem:[%s2245_s6] ss:$0 sm:$0xff] }
 0x1f8   :  { %998 = vmatpush.msrb.mxu2 %v642_v32  ;;  %1018 = vmatpush.msrb.mxu3 %v658_v33 }
 0x1f9   :  { %1038 = vmatpush.msra.mxu0 %v674_v34  ;;  %1058 = vmatpush.msra.mxu1 %v690_v35 }
 0x1fa   :  { %999 = vmatpush.msrb.mxu2 %v641_v36  ;;  %1019 = vmatpush.msrb.mxu3 %v657_v37 }
 0x1fb   :  { %1039 = vmatpush.msra.mxu0 %v673_v38  ;;  %1059 = vmatpush.msra.mxu1 %v689_v39 }
 0x1fc   :  { %1000 = vmatpush.msrb.mxu2 %v640_v40  ;;  %1020 = vmatpush.msrb.mxu3 %v656_v14 }
 0x1fd   :  { %1040 = vmatpush.msra.mxu0 %v672_v4  ;;  %1060 = vmatpush.msra.mxu1 %v688_v17 }
 0x1fe   :  { %1001 = vmatpush.msrb.mxu2 %v639_v41  ;;  %1021 = vmatpush.msrb.mxu3 %v655_v42 }
 0x1ff   :  { %1041 = vmatpush.msra.mxu0 %v671_v43  ;;  %1061 = vmatpush.msra.mxu1 %v687_v44 }
 0x200   :  { %1002 = vmatpush.msrb.mxu2 %v638_v45  ;;  %1022 = vmatpush.msrb.mxu3 %v654_v46 }
 0x201   :  { %1042 = vmatpush.msra.mxu0 %v670_v47  ;;  %1062 = vmatpush.msra.mxu1 %v686_v48 }
 0x202   :  { %1003 = vmatmul.f32.vlgmr.msrb.gmra.mxu2 %v727_v49  ;;  %1023 = vmatmul.f32.vlgmr.msrb.gmra.mxu3 %v728_v50 }
 0x203   :  { %1043 = vmatmul.f32.vlgmr.msra.gmra.mxu0 %v729_v51  ;;  %1063 = vmatmul.f32.vlgmr.msra.gmra.mxu1 %v730_v52 }
 0x204   :  { %1092 = vmatpush.msra.mxu2 %v1071_v2 }
 0x206   :  { %1093 = vmatpush.msra.mxu2 %v1070_v3 }
 0x208   :  { %1094 = vmatpush.msra.mxu2 %v1069_v5 }
 0x20a   :  { %1095 = vmatpush.msra.mxu2 %v1068_v6 }
 0x23a   :  { %v804_v58 = vpop.f32.mrf.mxu0  ;;  %v824_v60 = vpop.f32.mrf.mxu1 }
 0x23f   :  { %v764_v54 = vpop.f32.mrf.mxu2  ;;  %v784_v56 = vpop.f32.mrf.mxu3 }
 0x240   :  { %v765_v55 = vadd.f32 %v1176_v53, %v764_v54 }
 0x242   :  { %v785_v57 = vadd.f32 %v784_v56, %v765_v55 }
 0x244   :  { %v805_v59 = vadd.f32 %v804_v58, %v785_v57  ;;  %v884_v7 = vpop.f32.mrf.mxu0  ;;  %v904_v9 = vpop.f32.mrf.mxu1 }
 0x246   :  { %v825_v61 = vadd.f32 %v824_v60, %v805_v59 }
 0x249   :  { %v844_v62 = vpop.f32.mrf.mxu2  ;;  %v864_v0 = vpop.f32.mrf.mxu3 }
 0x24a   :  { %v845_v63 = vadd.f32 %v844_v62, %v825_v61 }
 0x24c   :  { %v865_v1 = vadd.f32 %v864_v0, %v845_v63 }
 0x24e   :  { %v885_v8 = vadd.f32 %v884_v7, %v865_v1 }
 0x250   :  { %v905_v11 = vadd.f32 %v904_v9, %v885_v8 }
 0x25e   :  { %v964_v16 = vpop.f32.mrf.mxu0  ;;  %v984_v19 = vpop.f32.mrf.mxu1 }
 0x263   :  { %v924_v10 = vpop.f32.mrf.mxu2  ;;  %v944_v13 = vpop.f32.mrf.mxu3 }
 0x264   :  { %v925_v12 = vadd.f32 %v924_v10, %v905_v11 }
 0x266   :  { %v945_v15 = vadd.f32 %v944_v13, %v925_v12 }
 0x268   :  { %v965_v18 = vadd.f32 %v964_v16, %v945_v15 }
 0x26a   :  { %v985_v20 = vadd.f32 %v984_v19, %v965_v18 }
 0x280   :  { %v1044_v25 = vpop.f32.mrf.mxu0  ;;  %v1064_v27 = vpop.f32.mrf.mxu1 }
 0x285   :  { %v1004_v21 = vpop.f32.mrf.mxu2  ;;  %v1024_v23 = vpop.f32.mrf.mxu3 }
 0x286   :  { %v1005_v22 = vadd.f32 %v1004_v21, %v985_v20 }
 0x288   :  { %v1025_v24 = vadd.f32 %v1024_v23, %v1005_v22 }
 0x28a   :  { %v1045_v26 = vadd.f32 %v1044_v25, %v1025_v24 }
 0x28c   :  { %v1065_v28 = vadd.f32 %v1064_v27, %v1045_v26 }
 0x28e   :  { %v1067_v29 = vmax.f32 %v1065_v28, 0.0 }
 0x290   :  { %1138 = vmatmul.msk.f32.vlgmr.msra.gmra.mxu2 %vm1076_vm15, %v1067_v29 }
 0x313   :  { %v1097_v31 = vpop.f32.mrf.mxu2 }
 0x314   :  { %v1098_v32 = vadd.f32 %v1177_v30, %v1097_v31 }
 0x316   :  { %1101 = vst.msk [vmem:[#allocation6] sm:$0x3] %vm1100_vm0, %v1098_v32 }
 0x317   :  { %1123 = dma.vmem_to_hbm [thread:$0]  %s1119_s24, 32, %s1121_s27, [#allocation7]  }
 0x318   :  { %1226 = dma.done.wait [#allocation5], 512  }
 0x319   :  { %1227 = vsyncadd [#allocation5], 4294966784 }
 0x31a   :  { %1228 = dma.done.wait [#allocation7], 32  }
 0x31b   :  { %1229 = vsyncadd [#allocation7], 4294967264 }
 0x31c   :  { %1132 = vsyncpa [#allocation5], 1 }
 0x31d   :  { %1133 = vsyncpa [#allocation7], 1 }

</bundles_post_ra>
